<compile_context>
chip_gen: v5e
topology: v5e:2x2
jax: 0.10.0
libtpu: 0.0.40
codegen_flags: <defaults>
</compile_context>

<pallas_src>
import math
import functools
import numpy as np
import jax
import jax.numpy as jnp
from jax.experimental import pallas as pl
from jax.experimental.pallas import tpu as pltpu


_VMEM_LIMIT = 32 * 1024 * 1024  # safe on v5e/v6e (128 MiB) and v7x (64 MiB per TC)


# ----------------------------------------------------------------------------- #
# Padding / tiling helpers
# ----------------------------------------------------------------------------- #
def _round_up(x, m):
    return (x + m - 1) // m * m


def _pad2d(x, rows, cols):
    r, c = x.shape
    if r == rows and c == cols:
        return x
    return jnp.pad(x, ((0, rows - r), (0, cols - c)))


def _pad_cols(x, unit=128):
    return _pad2d(x, x.shape[0], _round_up(x.shape[1], unit))


def _pick_tile(size, max_tile, unit, prefer_split):
    """Largest multiple of `unit` that divides `size` and is <= max_tile.
    With prefer_split, also <= size//2 when possible so parallel axes get >=2 tiles
    (keeps both v7x TensorCores busy) without adding any padding."""
    cap = min(max_tile, size)
    if prefer_split and size >= 2 * unit:
        cap = min(cap, size // 2)
    best = unit
    cand = unit
    while cand <= cap:
        if size % cand == 0:
            best = cand
        cand += unit
    return best


def _edge_tile(e128, cap=2048):
    """Edge-axis tile (multiple of 128); big blocks amortize ~0.35us grid-step overhead."""
    if e128 >= 2 * cap:
        return cap
    if e128 >= 256:
        return max(128, (e128 // 256) * 128)
    return e128


# ----------------------------------------------------------------------------- #
# Host-side edge partition (CSR-style, sorted by destination) for the SpMM kernel
# ----------------------------------------------------------------------------- #
@jax.tree_util.register_pytree_node_class
class EdgePartition:
    """Fixed edge set sorted by destination.

    Device arrays: src_sorted / dst_sorted padded to Ep (padding dst = -1 never matches a
    row), perm (original -> sorted order), tile_starts = first edge *block* each
    destination row-tile must visit (scalar-prefetched into SMEM).  Static aux: tile
    sizes and kmax (max blocks any tile visits) -> rectangular (n_tiles, kmax) grid."""

    def __init__(self, src_sorted, dst_sorted, perm, tile_starts, *,
                 num_edges, num_nodes, tile_rows, edge_block, kmax):
        self.src_sorted = src_sorted
        self.dst_sorted = dst_sorted
        self.perm = perm
        self.tile_starts = tile_starts
        self.num_edges = num_edges
        self.num_nodes = num_nodes
        self.tile_rows = tile_rows
        self.edge_block = edge_block
        self.kmax = kmax

    def tree_flatten(self):
        children = (self.src_sorted, self.dst_sorted, self.perm, self.tile_starts)
        aux = (self.num_edges, self.num_nodes, self.tile_rows, self.edge_block, self.kmax)
        return children, aux

    @classmethod
    def tree_unflatten(cls, aux, children):
        return cls(*children, num_edges=aux[0], num_nodes=aux[1],
                   tile_rows=aux[2], edge_block=aux[3], kmax=aux[4])


def build_edge_partition(src, dst, num_nodes, *, tile_rows_max=256, edge_block_max=2048):
    src = np.asarray(src, dtype=np.int64)
    dst = np.asarray(dst, dtype=np.int64)
    E = int(dst.shape[0])

    n8 = _round_up(max(num_nodes, 8), 8)
    tile_rows = _pick_tile(n8, tile_rows_max, 8, True)
    n_tiles = n8 // tile_rows

    E128 = _round_up(max(E, 1), 128)
    edge_block = _edge_tile(E128, edge_block_max)
    Ep = _round_up(E128, edge_block)
    nblocks = Ep // edge_block

    order = np.argsort(dst, kind="stable")
    dst_s = dst[order]
    src_s = src[order]

    bounds = np.arange(n_tiles + 1, dtype=np.int64) * tile_rows
    starts_e = np.searchsorted(dst_s, bounds[:-1], side="left")
    ends_e = np.searchsorted(dst_s, bounds[1:], side="left")
    start_blk = starts_e // edge_block
    end_blk = (ends_e + edge_block - 1) // edge_block
    end_blk = np.maximum(end_blk, start_blk + 1)
    kmax = int(min(nblocks, max(1, int(np.max(end_blk - start_blk)))))
    # Shift windows so start+kmax never runs past the last block: no OOB block index and
    # no block is visited twice for the same row tile (extra early blocks are masked by dst).
    start_blk = np.minimum(start_blk, nblocks - kmax)

    dst_pad = np.full((Ep,), -1, np.int32)
    dst_pad[:E] = dst_s
    src_pad = np.zeros((Ep,), np.int32)
    src_pad[:E] = src_s

    return EdgePartition(
        jnp.asarray(src_pad), jnp.asarray(dst_pad),
        jnp.asarray(order.astype(np.int32)), jnp.asarray(start_blk.astype(np.int32)),
        num_edges=E, num_nodes=num_nodes,
        tile_rows=tile_rows, edge_block=edge_block, kmax=kmax)


# ----------------------------------------------------------------------------- #
# Sparse SpMM aggregation kernel: out[d] = sum_e w_e * x[src_e]  (dst-sorted edges)
# ----------------------------------------------------------------------------- #
def _spmm_kernel(starts_ref, dst_ref, w_ref, xs_ref, *refs, activation, has_residual):
    if has_residual:
        resid_ref, o_ref, acc_ref = refs
    else:
        o_ref, acc_ref = refs

    k = pl.program_id(1)

    @pl.when(k == 0)
    def _():
        acc_ref[...] = jnp.zeros_like(acc_ref)

    tm = acc_ref.shape[0]
    te = dst_ref.shape[1]
    row0 = pl.program_id(0) * tm
    rows = jax.lax.broadcasted_iota(jnp.int32, (tm, te), 0) + row0
    # One-hot scatter-add as an MXU matmul: gate[r, e] = w_e if dst_e == row r else 0.
    gate = jnp.where(rows == dst_ref[...], w_ref[...], 0.0).astype(jnp.bfloat16)
    acc_ref[...] += jnp.dot(gate, xs_ref[...], preferred_element_type=jnp.float32)

    @pl.when(k == pl.num_programs(1) - 1)
    def _():
        out = acc_ref[...]
        if activation == "leaky_relu":
            out = jnp.where(out > 0, out, 0.01 * out)
        if has_residual:
            out = out + resid_ref[...]
        o_ref[...] = out.astype(o_ref.dtype)


def spmm_aggregate(part, weights, x, *, residual=None, activation=None):
    """out[dst] = activation(sum_e w_e * x[src_e]) (+ residual), dst in [0, num_nodes)."""
    n, D = x.shape
    Dp = _round_up(D, 128)
    x_p = _pad2d(x, n, Dp)

    tm, te, kmax = part.tile_rows, part.edge_block, part.kmax
    n_tiles = part.tile_starts.shape[0]
    Ep = part.dst_sorted.shape[0]
    E = part.perm.shape[0]
    n_pad = n_tiles * tm

    w_sorted = jnp.take(weights.astype(jnp.float32), part.perm)
    w2d = jnp.pad(w_sorted, (0, Ep - E)).reshape(1, Ep)
    dst2d = part.dst_sorted.reshape(1, Ep)
    # Messages gathered once per call in bf16 (MXU input); plain-JAX gather glue.
    xs = jnp.take(x_p.astype(jnp.bfloat16), part.src_sorted, axis=0)        # (Ep, Dp)

    has_res = residual is not None

    def edge_map(i, k, starts):
        return (0, starts[i] + k)

    def xs_map(i, k, starts):
        return (starts[i] + k, 0)

    def row_map(i, k, starts):
        return (i, 0)

    in_specs = [pl.BlockSpec((1, te), edge_map),
                pl.BlockSpec((1, te), edge_map),
                pl.BlockSpec((te, Dp), xs_map)]
    inputs = [dst2d, w2d, xs]
    if has_res:
        in_specs.append(pl.BlockSpec((tm, Dp), row_map))
        inputs.append(_pad2d(residual, n_pad, Dp).astype(jnp.float32))

    grid_spec = pltpu.PrefetchScalarGridSpec(
        num_scalar_prefetch=1,
        grid=(n_tiles, kmax),
        in_specs=in_specs,
        out_specs=pl.BlockSpec((tm, Dp), row_map),
        scratch_shapes=[pltpu.VMEM((tm, Dp), jnp.float32)],
    )
    out = pl.pallas_call(
        functools.partial(_spmm_kernel, activation=activation, has_residual=has_res),
        grid_spec=grid_spec,
        out_shape=jax.ShapeDtypeStruct((n_pad, Dp), jnp.float32),
        compiler_params=pltpu.CompilerParams(
            dimension_semantics=("parallel", "arbitrary"),
            vmem_limit_bytes=_VMEM_LIMIT,
        ),
        cost_estimate=pl.CostEstimate(
            flops=2 * n_tiles * kmax * tm * te * Dp,
            transcendentals=0,
            bytes_accessed=2 * Ep * Dp + 4 * n_pad * Dp + 8 * Ep,
        ),
    )(part.tile_starts, *inputs)
    return out[:n]


# ----------------------------------------------------------------------------- #
# Tiled matmul with fused activation / residual epilogue (bf16 cast in-kernel)
# ----------------------------------------------------------------------------- #
def _matmul_kernel(a_ref, b_ref, *refs, activation, has_residual):
    if has_residual:
        resid_ref, o_ref, acc_ref = refs
    else:
        o_ref, acc_ref = refs

    @pl.when(pl.program_id(2) == 0)
    def _():
        acc_ref[...] = jnp.zeros_like(acc_ref)

    acc_ref[...] += jnp.dot(a_ref[...].astype(jnp.bfloat16),
                            b_ref[...].astype(jnp.bfloat16),
                            preferred_element_type=jnp.float32)

    @pl.when(pl.program_id(2) == pl.num_programs(2) - 1)
    def _():
        out = acc_ref[...]
        if activation == "leaky_relu":
            out = jnp.where(out > 0, out, 0.01 * out)  # torch default slope
        if has_residual:
            out = out + resid_ref[...]
        o_ref[...] = out.astype(o_ref.dtype)


def matmul(a, b, *, activation=None, residual=None, keep_pad_cols=False,
           tm_max=512, tn_max=256, tk_max=512):
    """act(A @ B) (+ residual): f32 HBM operands, bf16 MXU inputs, f32 VMEM accumulator."""
    M, K = a.shape
    K2, N = b.shape
    assert K == K2
    Mp, Np, Kp = _round_up(M, 8), _round_up(N, 128), _round_up(K, 128)
    tm = _pick_tile(Mp, tm_max, 8, True)
    tn = _pick_tile(Np, tn_max, 128, False)
    tk = _pick_tile(Kp, tk_max, 128, False)

    a_p = _pad2d(a, Mp, Kp)
    b_p = _pad2d(b, Kp, Np)
    has_res = residual is not None

    in_specs = [pl.BlockSpec((tm, tk), lambda i, j, k: (i, k)),
                pl.BlockSpec((tk, tn), lambda i, j, k: (k, j))]
    inputs = [a_p, b_p]
    if has_res:
        in_specs.append(pl.BlockSpec((tm, tn), lambda i, j, k: (i, j)))
        inputs.append(_pad2d(residual, Mp, Np).astype(jnp.float32))

    out = pl.pallas_call(
        functools.partial(_matmul_kernel, activation=activation, has_residual=has_res),
        grid=(Mp // tm, Np // tn, Kp // tk),
        in_specs=in_specs,
        out_specs=pl.BlockSpec((tm, tn), lambda i, j, k: (i, j)),
        out_shape=jax.ShapeDtypeStruct((Mp, Np), jnp.float32),
        scratch_shapes=[pltpu.VMEM((tm, tn), jnp.float32)],
        compiler_params=pltpu.CompilerParams(
            dimension_semantics=("parallel", "parallel", "arbitrary"),
            vmem_limit_bytes=_VMEM_LIMIT,
        ),
        cost_estimate=pl.CostEstimate(
            flops=2 * Mp * Np * Kp,
            transcendentals=0,
            bytes_accessed=4 * (Mp * Kp + Kp * Np + Mp * Np),
        ),
    )(*inputs)
    cols = Np if keep_pad_cols else N
    return out[:M, :cols]


def sage_transform(agg, x, w_l, w_r, *, activation=None, residual=None):
    """act([agg | x] @ [W_l ; W_r]) (+ residual): single 2K-deep contraction so the
    256-deep MXU of v6e/v7x is filled (one dot per K step instead of two half-deep dots)."""
    Kp = _round_up(x.shape[1], 128)
    a = jnp.concatenate([_pad2d(agg, agg.shape[0], Kp), _pad2d(x, x.shape[0], Kp)], axis=1)
    w = jnp.concatenate([_pad2d(w_l, Kp, w_l.shape[1]),
                         _pad2d(w_r, Kp, w_r.shape[1])], axis=0)
    return matmul(a, w, activation=activation, residual=residual, keep_pad_cols=True)


# ----------------------------------------------------------------------------- #
# Row-wise L2 normalize (and fused residual + normalize for the routing update)
# ----------------------------------------------------------------------------- #
def _l2norm_kernel(x_ref, o_ref):
    x = x_ref[...]
    nrm = jnp.sqrt(jnp.sum(x * x, axis=-1, keepdims=True))
    o_ref[...] = x / jnp.maximum(nrm, 1e-12)      # == F.normalize(p=2, eps=1e-12)


def _add_l2norm_kernel(a_ref, b_ref, o_ref):
    x = a_ref[...] + b_ref[...]
    nrm = jnp.sqrt(jnp.sum(x * x, axis=-1, keepdims=True))
    o_ref[...] = x / jnp.maximum(nrm, 1e-12)


def _rowwise_call(kernel, rows, cols, *args, tm_max=1024):
    Mp, Dp = _round_up(rows, 8), _round_up(cols, 128)
    tm = _pick_tile(Mp, tm_max, 8, True)
    padded = [_pad2d(a, Mp, Dp) for a in args]
    out = pl.pallas_call(
        kernel,
        grid=(Mp // tm,),
        in_specs=[pl.BlockSpec((tm, Dp), lambda i: (i, 0)) for _ in padded],
        out_specs=pl.BlockSpec((tm, Dp), lambda i: (i, 0)),
        out_shape=jax.ShapeDtypeStruct((Mp, Dp), jnp.float32),
        compiler_params=pltpu.CompilerParams(
            dimension_semantics=("parallel",),
            vmem_limit_bytes=_VMEM_LIMIT,
        ),
    )(*padded)
    return out[:rows]          # keep padded columns (carried through the model)


def l2norm(x):
    return _rowwise_call(_l2norm_kernel, x.shape[0], x.shape[1], x)


def add_l2norm(a, b):
    """normalize(a + b) fused — one HBM round trip for the routing residual update."""
    return _rowwise_call(_add_l2norm_kernel, a.shape[0], a.shape[1], a, b)


# ----------------------------------------------------------------------------- #
# Lane-dense per-edge inner-product scores
# ----------------------------------------------------------------------------- #
def _edge_score_kernel(xs_ref, xd_ref, o_ref):
    # feature-major inputs (Dp, te); reduce over sublane axis -> lane-dense (1, te)
    o_ref[...] = jnp.sum(xs_ref[...] * xd_ref[...], axis=0, keepdims=True)


def edge_scores(x, src, dst, *, te_max=2048):
    """alpha_e = <x[src_e], x[dst_e]>; x is the (n, Dp) node matrix; returns (E,) f32."""
    n, D = x.shape
    Dp = _round_up(D, 8)
    E = src.shape[0]
    E128 = _round_up(E, 128)
    te = _edge_tile(E128, te_max)
    Ep = _round_up(E128, te)

    x_t = _pad2d(x, n, Dp).T                       # one small (Dp, n) transpose per call
    xs = jnp.pad(jnp.take(x_t, src, axis=1), ((0, 0), (0, Ep - E)))
    xd = jnp.pad(jnp.take(x_t, dst, axis=1), ((0, 0), (0, Ep - E)))

    out = pl.pallas_call(
        _edge_score_kernel,
        grid=(Ep // te,),
        in_specs=[pl.BlockSpec((Dp, te), lambda i: (0, i)),
                  pl.BlockSpec((Dp, te), lambda i: (0, i))],
        out_specs=pl.BlockSpec((1, te), lambda i: (0, i)),
        out_shape=jax.ShapeDtypeStruct((1, Ep), jnp.float32),
        compiler_params=pltpu.CompilerParams(
            dimension_semantics=("parallel",),
            vmem_limit_bytes=_VMEM_LIMIT,
        ),
    )(xs, xd)
    return out[0, :E]


# ----------------------------------------------------------------------------- #
# CGCN / EGCN / Net forward
# ----------------------------------------------------------------------------- #
def cgcn_forward(p, raw_feat, part_di, part_full, ei_di, ei_full, item_nodes,
                 num_user, num_item, num_routing=2, has_act=True, has_norm=True):
    dim_C = p["w_student"].shape[1]

    # FeatureExtractorModel.student_model ~ Linear(dim_feat -> dim_C), leaky_relu fused
    features_act = matmul(raw_feat, p["w_student"], activation="leaky_relu",
                          keep_pad_cols=True)                     # (num_item, Dp)
    transfer_feature = features_act

    preference = _pad_cols(p["preference"])                        # (num_user, Dp)
    features = features_act
    if has_norm:
        preference = l2norm(preference)
        features = l2norm(features)

    src_di, dst_di = ei_di[0], ei_di[1]
    for _ in range(num_routing):
        x = jnp.concatenate([preference, features], axis=0)        # (n, Dp)
        alpha = edge_scores(x, src_di, dst_di)                     # (E,)
        agg = spmm_aggregate(part_di, alpha, x)                    # sparse GAT aggregation
        if has_norm:
            preference = add_l2norm(preference, agg[:num_user])    # fused residual + norm
        else:
            preference = preference + agg[:num_user]

    x = jnp.concatenate([preference, features], axis=0)
    alpha_full = edge_scores(x, ei_full[0], ei_full[1])            # (2E,)
    rep = spmm_aggregate(part_full, alpha_full, x, residual=x,     # x + act(agg) fused
                         activation="leaky_relu" if has_act else None)

    # TODO(synk): FeatureExtractorModel's class/kd/feature losses are not defined in the
    # provided source; deterministic surrogate scalars from the student features.
    tran_feature = transfer_feature[item_nodes][:, :dim_C]
    class_loss = jnp.mean(tran_feature ** 2)
    kd_loss = jnp.mean(jnp.abs(tran_feature))
    feature_loss = jnp.mean(tran_feature)

    return rep, alpha_full.reshape(-1, 1), class_loss, kd_loss, feature_loss, tran_feature


def egcn_forward(p, part_full, weight_vec, has_act=True, has_norm=True):
    x = _pad_cols(p["id_embedding"])
    if has_norm:
        x = l2norm(x)
    act = "leaky_relu" if has_act else None

    agg1 = spmm_aggregate(part_full, weight_vec, x)                # sparse weighted agg
    x1 = sage_transform(agg1, x, p["w1_l"], p["w1_r"], activation=act)
    agg2 = spmm_aggregate(part_full, weight_vec, x1)
    # x + x1 + leaky_relu(sage2(x1)): residual sum fused into the matmul epilogue
    return sage_transform(agg2, x1, p["w2_l"], p["w2_r"], activation=act,
                          residual=x + x1)


def net_forward(params, graphs, item_tensor, num_user, num_item):
    dim_E = params["id_gcn"]["id_embedding"].shape[1]
    dim_C = params["v_gcn"]["w_student"].shape[1]

    # dropout_adj with p=0 -> identity
    ei = params["edge_index"]                                      # (2, E) item -> user
    ei_full = jnp.concatenate([ei, ei[::-1]], axis=1)              # (2, 2E)
    item_nodes = item_tensor - num_user

    v_rep, w_v, cl_v, kd_v, fl_v, student_v = cgcn_forward(
        params["v_gcn"], params["v_feat"], graphs["di"], graphs["full"],
        ei, ei_full, item_nodes, num_user, num_item)
    t_rep, w_t, cl_t, kd_t, fl_t, student_t = cgcn_forward(
        params["t_gcn"], params["t_feat"], graphs["di"], graphs["full"],
        ei, ei_full, item_nodes, num_user, num_item)

    num_modal = 2
    class_loss = cl_v + cl_t
    kd_loss = kd_v + kd_t
    feature_loss = fl_v + fl_t

    weight = (w_v + w_t) / num_modal           # weight_mode == 'mean'
    weight = jnp.maximum(weight, 0.0)          # pruning -> relu

    id_rep = egcn_forward(params["id_gcn"], graphs["full"], weight[:, 0])

    # Deferred column slicing: activations carried padded until this point.
    representation = jnp.concatenate(
        [id_rep[:, :dim_E], v_rep[:, :dim_C], t_rep[:, :dim_C]], axis=1)

    fused_feature = jnp.concatenate([student_v, student_t], axis=1)
    # TODO(synk): FeatureFusionModel is not defined in the provided source; surrogate
    # fusion loss = mean-squared projection of the fused student features (Pallas matmul).
    fusion_loss = jnp.mean(matmul(fused_feature, params["w_fusion"]) ** 2)

    class_loss = class_loss / num_modal
    kd_loss = kd_loss / num_modal
    feature_loss = feature_loss / num_modal
    return representation, fusion_loss + class_loss, kd_loss + feature_loss


net_forward_jit = jax.jit(net_forward, static_argnums=(3, 4))


# ----------------------------------------------------------------------------- #
# Deterministic parameter construction
# ----------------------------------------------------------------------------- #
def xavier_normal(key, shape):
    fan_in, fan_out = shape[0], shape[1]
    std = math.sqrt(2.0 / (fan_in + fan_out))
    return (std * jax.random.normal(key, shape)).astype(jnp.float32)


def build_params(key, num_user, num_item, dim_E, dim_C, v_dim, t_dim, num_edges):
    keys = jax.random.split(key, 16)
    n = num_user + num_item

    # Directed edges: item-node -> user (routing updates user preferences).
    users = jax.random.randint(keys[0], (num_edges,), 0, num_user)
    items = jax.random.randint(keys[1], (num_edges,), 0, num_item) + num_user
    edge_index = jnp.stack([items, users], axis=0).astype(jnp.int32)   # (2, E) src, dst

    params = {
        "edge_index": edge_index,
        "v_feat": jax.random.normal(keys[2], (num_item, v_dim), jnp.float32),
        "t_feat": jax.random.normal(keys[3], (num_item, t_dim), jnp.float32),
        "v_gcn": {
            "preference": xavier_normal(keys[4], (num_user, dim_C)),
            "w_student": xavier_normal(keys[5], (v_dim, dim_C)),
        },
        "t_gcn": {
            "preference": xavier_normal(keys[6], (num_user, dim_C)),
            "w_student": xavier_normal(keys[7], (t_dim, dim_C)),
        },
        "id_gcn": {
            "id_embedding": xavier_normal(keys[8], (n, dim_E)),
            "w1_l": xavier_normal(keys[9], (dim_E, dim_E)),
            "w1_r": xavier_normal(keys[10], (dim_E, dim_E)),
            "w2_l": xavier_normal(keys[11], (dim_E, dim_E)),
            "w2_r": xavier_normal(keys[12], (dim_E, dim_E)),
        },
        "w_fusion": xavier_normal(keys[13], (2 * dim_C, dim_C)),
    }
    return params


# ----------------------------------------------------------------------------- #
if __name__ == "__main__":
    num_user, num_item = 8, 8
    dim_E, dim_C = 32, 32
    v_dim, t_dim = 64, 48
    num_edges = 16
    n = num_user + num_item

    key = jax.random.PRNGKey(0)
    k_params, k_items = jax.random.split(key)
    params = build_params(k_params, num_user, num_item, dim_E, dim_C, v_dim, t_dim, num_edges)

    # Host-side (one-time) edge partitions for the sparse SpMM kernel.
    ei_np = np.asarray(params["edge_index"])
    src_np, dst_np = ei_np[0], ei_np[1]
    graphs = {
        "di": build_edge_partition(src_np, dst_np, n),
        "full": build_edge_partition(np.concatenate([src_np, dst_np]),
                                     np.concatenate([dst_np, src_np]), n),
    }

    # item_tensor holds item node ids in [num_user, num_user + num_item)
    item_tensor = jax.random.randint(
        k_items, (4,), num_user, num_user + num_item).astype(jnp.int32)

    representation, loss_a, loss_b = net_forward_jit(
        params, graphs, item_tensor, num_user, num_item)
    jax.block_until_ready(representation)
    jax.block_until_ready(loss_a)
    jax.block_until_ready(loss_b)

    assert representation.shape == (n, dim_E + 2 * dim_C)
    assert loss_a.shape == () and loss_b.shape == ()
    assert bool(jnp.all(jnp.isfinite(representation)))
    assert bool(jnp.isfinite(loss_a)) and bool(jnp.isfinite(loss_b))
    print("KERNEL_OK")
</pallas_src>

<mosaic_0001>
module attributes {stable_mosaic.version = 11 : i64} {
  func.func @_matmul_kernel(%arg0: i32, %arg1: i32, %arg2: i32, %arg3: memref<8x128xf32, #tpu.memory_space<vmem>>, %arg4: memref<128x128xf32, #tpu.memory_space<vmem>>, %arg5: memref<8x128xf32, #tpu.memory_space<vmem>>, %arg6: memref<8x128xf32, #tpu.memory_space<vmem>>) attributes {dimension_semantics = [#tpu.dimension_semantics<parallel>, #tpu.dimension_semantics<parallel>, #tpu.dimension_semantics<arbitrary>], iteration_bounds = array<i64: 1, 1, 1>, scalar_prefetch = 0 : i64, scratch_operands = 1 : i64, tpu.core_type = #tpu.core_type<tc>, window_params = [{transform_indices = @transform_0, window_bounds = array<i64: 8, 128>}, {transform_indices = @transform_1, window_bounds = array<i64: 128, 128>}, {transform_indices = @transform_2, window_bounds = array<i64: 8, 128>}]} {
    %c0_i32 = arith.constant 0 : i32
    %0 = arith.cmpi eq, %arg2, %c0_i32 : i32
    %1 = arith.extui %0 : i1 to i32
    %c0_i32_0 = arith.constant 0 : i32
    %2 = arith.cmpi ne, %1, %c0_i32_0 : i32
    scf.if %2 {
      %cst_10 = arith.constant 0.000000e+00 : f32
      %14 = vector.broadcast %cst_10 : f32 to vector<8x128xf32>
      %c0_11 = arith.constant 0 : index
      %c0_12 = arith.constant 0 : index
      %15 = vector.load %arg6[%c0_11, %c0_12] : memref<8x128xf32, #tpu.memory_space<vmem>>, vector<8x128xf32>
      tpu.vector_store %arg6[%c0_11, %c0_12], %14 {strides = array<i32>} : memref<8x128xf32, #tpu.memory_space<vmem>>, vector<8x128xf32>,
    } else {
    }
    %c0 = arith.constant 0 : index
    %c0_1 = arith.constant 0 : index
    %3 = vector.load %arg6[%c0, %c0_1] : memref<8x128xf32, #tpu.memory_space<vmem>>, vector<8x128xf32>
    %c0_2 = arith.constant 0 : index
    %c0_3 = arith.constant 0 : index
    %4 = vector.load %arg3[%c0_2, %c0_3] : memref<8x128xf32, #tpu.memory_space<vmem>>, vector<8x128xf32>
    %5 = arith.truncf %4 : vector<8x128xf32> to vector<8x128xbf16>
    %c0_4 = arith.constant 0 : index
    %c0_5 = arith.constant 0 : index
    %6 = vector.load %arg4[%c0_4, %c0_5] : memref<128x128xf32, #tpu.memory_space<vmem>>, vector<128x128xf32>
    %7 = arith.truncf %6 : vector<128x128xf32> to vector<128x128xbf16>
    %cst = arith.constant dense<0.000000e+00> : vector<8x128xf32>
    %8 = tpu.matmul %5, %7, %cst {dimension_numbers = #tpu.dot_dimension_numbers<[1], [0], [0], [1], [0, 0, 1, 1], [], []>} : vector<8x128xbf16>, vector<128x128xbf16>, vector<8x128xf32> -> vector<8x128xf32>
    %9 = arith.addf %3, %8 : vector<8x128xf32>
    %c0_6 = arith.constant 0 : index
    %c0_7 = arith.constant 0 : index
    %10 = vector.load %arg6[%c0_6, %c0_7] : memref<8x128xf32, #tpu.memory_space<vmem>>, vector<8x128xf32>
    tpu.vector_store %arg6[%c0_6, %c0_7], %9 {strides = array<i32>} : memref<8x128xf32, #tpu.memory_space<vmem>>, vector<8x128xf32>,
    %c0_i32_8 = arith.constant 0 : i32
    %11 = arith.cmpi eq, %arg2, %c0_i32_8 : i32
    %12 = arith.extui %11 : i1 to i32
    %c0_i32_9 = arith.constant 0 : i32
    %13 = arith.cmpi ne, %12, %c0_i32_9 : i32
    scf.if %13 {
      %c0_10 = arith.constant 0 : index
      %c0_11 = arith.constant 0 : index
      %14 = vector.load %arg6[%c0_10, %c0_11] : memref<8x128xf32, #tpu.memory_space<vmem>>, vector<8x128xf32>
      %cst_12 = arith.constant 0.000000e+00 : f32
      %15 = vector.broadcast %cst_12 : f32 to vector<8x128xf32>
      %16 = arith.cmpf ogt, %14, %15 : vector<8x128xf32>
      %cst_13 = arith.constant 0.00999999977 : f32
      %17 = vector.broadcast %cst_13 : f32 to vector<8x128xf32>
      %18 = arith.mulf %17, %14 : vector<8x128xf32>
      %19 = arith.select %16, %14, %18 : vector<8x128xi1>, vector<8x128xf32>
      %c0_14 = arith.constant 0 : index
      %c0_15 = arith.constant 0 : index
      %20 = vector.load %arg5[%c0_14, %c0_15] : memref<8x128xf32, #tpu.memory_space<vmem>>, vector<8x128xf32>
      tpu.vector_store %arg5[%c0_14, %c0_15], %19 {strides = array<i32>} : memref<8x128xf32, #tpu.memory_space<vmem>>, vector<8x128xf32>,
    } else {
    }
    return
  }
  func.func @transform_0(%arg0: i32, %arg1: i32, %arg2: i32) -> (i32, i32) {
    %c0_i32 = arith.constant 0 : i32
    return %arg0, %arg2 : i32, i32
  }
  func.func @transform_1(%arg0: i32, %arg1: i32, %arg2: i32) -> (i32, i32) {
    %c0_i32 = arith.constant 0 : i32
    return %arg2, %arg1 : i32, i32
  }
  func.func @transform_2(%arg0: i32, %arg1: i32, %arg2: i32) -> (i32, i32) {
    %c0_i32 = arith.constant 0 : i32
    return %arg0, %arg1 : i32, i32
  }
}

module attributes {stable_mosaic.version = 11 : i64} {
  func.func @_l2norm_kernel(%arg0: i32, %arg1: memref<8x128xf32, #tpu.memory_space<vmem>>, %arg2: memref<8x128xf32, #tpu.memory_space<vmem>>) attributes {dimension_semantics = [#tpu.dimension_semantics<parallel>], iteration_bounds = array<i64: 1>, scalar_prefetch = 0 : i64, scratch_operands = 0 : i64, tpu.core_type = #tpu.core_type<tc>, window_params = [{transform_indices = @transform_0, window_bounds = array<i64: 8, 128>}, {transform_indices = @transform_1, window_bounds = array<i64: 8, 128>}]} {
    %c0 = arith.constant 0 : index
    %c0_0 = arith.constant 0 : index
    %0 = vector.load %arg1[%c0, %c0_0] : memref<8x128xf32, #tpu.memory_space<vmem>>, vector<8x128xf32>
    %1 = arith.mulf %0, %0 : vector<8x128xf32>
    %cst = arith.constant dense<0.000000e+00> : vector<8xf32>
    %2 = vector.multi_reduction <add>, %1, %cst [1] : vector<8x128xf32> to vector<8xf32>
    %3 = vector.shape_cast %2 : vector<8xf32> to vector<8x1xf32>
    %4 = math.sqrt %3 : vector<8x1xf32>
    %cst_1 = arith.constant 9.99999996E-13 : f32
    %5 = vector.broadcast %cst_1 : f32 to vector<8x1xf32>
    %6 = arith.maximumf %4, %5 : vector<8x1xf32>
    %7 = vector.broadcast %6 : vector<8x1xf32> to vector<8x128xf32>
    %8 = arith.divf %0, %7 : vector<8x128xf32>
    %c0_2 = arith.constant 0 : index
    %c0_3 = arith.constant 0 : index
    %9 = vector.load %arg2[%c0_2, %c0_3] : memref<8x128xf32, #tpu.memory_space<vmem>>, vector<8x128xf32>
    tpu.vector_store %arg2[%c0_2, %c0_3], %8 {strides = array<i32>} : memref<8x128xf32, #tpu.memory_space<vmem>>, vector<8x128xf32>,
    return
  }
  func.func @transform_0(%arg0: i32) -> (i32, i32) {
    %c0_i32 = arith.constant 0 : i32
    %c0_i32_0 = arith.constant 0 : i32
    return %arg0, %c0_i32 : i32, i32
  }
  func.func @transform_1(%arg0: i32) -> (i32, i32) {
    %c0_i32 = arith.constant 0 : i32
    %c0_i32_0 = arith.constant 0 : i32
    return %arg0, %c0_i32 : i32, i32
  }
}

module attributes {stable_mosaic.version = 11 : i64} {
  func.func @_edge_score_kernel(%arg0: i32, %arg1: memref<128x128xf32, #tpu.memory_space<vmem>>, %arg2: memref<128x128xf32, #tpu.memory_space<vmem>>, %arg3: memref<1x128xf32, #tpu.memory_space<vmem>>) attributes {dimension_semantics = [#tpu.dimension_semantics<parallel>], iteration_bounds = array<i64: 1>, scalar_prefetch = 0 : i64, scratch_operands = 0 : i64, tpu.core_type = #tpu.core_type<tc>, window_params = [{transform_indices = @transform_0, window_bounds = array<i64: 128, 128>}, {transform_indices = @transform_1, window_bounds = array<i64: 128, 128>}, {transform_indices = @transform_2, window_bounds = array<i64: 1, 128>}]} {
    %c0 = arith.constant 0 : index
    %c0_0 = arith.constant 0 : index
    %0 = vector.load %arg1[%c0, %c0_0] : memref<128x128xf32, #tpu.memory_space<vmem>>, vector<128x128xf32>
    %c0_1 = arith.constant 0 : index
    %c0_2 = arith.constant 0 : index
    %1 = vector.load %arg2[%c0_1, %c0_2] : memref<128x128xf32, #tpu.memory_space<vmem>>, vector<128x128xf32>
    %2 = arith.mulf %0, %1 : vector<128x128xf32>
    %cst = arith.constant dense<0.000000e+00> : vector<128xf32>
    %3 = vector.multi_reduction <add>, %2, %cst [0] : vector<128x128xf32> to vector<128xf32>
    %4 = vector.shape_cast %3 : vector<128xf32> to vector<1x128xf32>
    %c0_3 = arith.constant 0 : index
    %c0_4 = arith.constant 0 : index
    %5 = vector.load %arg3[%c0_3, %c0_4] : memref<1x128xf32, #tpu.memory_space<vmem>>, vector<1x128xf32>
    tpu.vector_store %arg3[%c0_3, %c0_4], %4 {strides = array<i32>} : memref<1x128xf32, #tpu.memory_space<vmem>>, vector<1x128xf32>,
    return
  }
  func.func @transform_0(%arg0: i32) -> (i32, i32) {
    %c0_i32 = arith.constant 0 : i32
    %c0_i32_0 = arith.constant 0 : i32
    return %c0_i32, %arg0 : i32, i32
  }
  func.func @transform_1(%arg0: i32) -> (i32, i32) {
    %c0_i32 = arith.constant 0 : i32
    %c0_i32_0 = arith.constant 0 : i32
    return %c0_i32, %arg0 : i32, i32
  }
  func.func @transform_2(%arg0: i32) -> (i32, i32) {
    %c0_i32 = arith.constant 0 : i32
    %c0_i32_0 = arith.constant 0 : i32
    return %c0_i32, %arg0 : i32, i32
  }
}

module attributes {stable_mosaic.version = 11 : i64} {
  func.func @_spmm_kernel(%arg0: i32, %arg1: i32, %arg2: memref<2xi32, #tpu.memory_space<smem>>, %arg3: memref<1x128xi32, #tpu.memory_space<vmem>>, %arg4: memref<1x128xf32, #tpu.memory_space<vmem>>, %arg5: memref<128x128xbf16, #tpu.memory_space<vmem>>, %arg6: memref<8x128xf32, #tpu.memory_space<vmem>>, %arg7: memref<8x128xf32, #tpu.memory_space<vmem>>) attributes {dimension_semantics = [#tpu.dimension_semantics<parallel>, #tpu.dimension_semantics<arbitrary>], iteration_bounds = array<i64: 2, 1>, scalar_prefetch = 1 : i64, scratch_operands = 1 : i64, tpu.core_type = #tpu.core_type<tc>, window_params = [{transform_indices = @transform_0, window_bounds = array<i64: 1, 128>}, {transform_indices = @transform_1, window_bounds = array<i64: 1, 128>}, {transform_indices = @transform_2, window_bounds = array<i64: 128, 128>}, {transform_indices = @transform_3, window_bounds = array<i64: 8, 128>}]} {
    %c0_i32 = arith.constant 0 : i32
    %0 = arith.cmpi eq, %arg1, %c0_i32 : i32
    %1 = arith.extui %0 : i1 to i32
    %c0_i32_0 = arith.constant 0 : i32
    %2 = arith.cmpi ne, %1, %c0_i32_0 : i32
    scf.if %2 {
      %cst_13 = arith.constant 0.000000e+00 : f32
      %24 = vector.broadcast %cst_13 : f32 to vector<8x128xf32>
      %c0_14 = arith.constant 0 : index
      %c0_15 = arith.constant 0 : index
      %25 = vector.load %arg7[%c0_14, %c0_15] : memref<8x128xf32, #tpu.memory_space<vmem>>, vector<8x128xf32>
      tpu.vector_store %arg7[%c0_14, %c0_15], %24 {strides = array<i32>} : memref<8x128xf32, #tpu.memory_space<vmem>>, vector<8x128xf32>,
    } else {
    }
    %c8_i32 = arith.constant 8 : i32
    %3 = arith.muli %arg0, %c8_i32 : i32
    %4 = tpu.iota {dimensions = array<i32: 0>} : vector<8x128xi32>
    %5 = vector.broadcast %3 : i32 to vector<8x128xi32>
    %6 = arith.addi %4, %5 : vector<8x128xi32>
    %c0 = arith.constant 0 : index
    %c0_1 = arith.constant 0 : index
    %7 = vector.load %arg3[%c0, %c0_1] : memref<1x128xi32, #tpu.memory_space<vmem>>, vector<1x128xi32>
    %8 = vector.broadcast %7 : vector<1x128xi32> to vector<8x128xi32>
    %9 = arith.cmpi eq, %6, %8 : vector<8x128xi32>
    %c0_2 = arith.constant 0 : index
    %c0_3 = arith.constant 0 : index
    %10 = vector.load %arg4[%c0_2, %c0_3] : memref<1x128xf32, #tpu.memory_space<vmem>>, vector<1x128xf32>
    %cst = arith.constant 0.000000e+00 : f32
    %11 = vector.shape_cast %10 : vector<1x128xf32> to vector<1x128xf32>
    %12 = vector.broadcast %11 : vector<1x128xf32> to vector<8x128xf32>
    %13 = vector.broadcast %cst : f32 to vector<8x128xf32>
    %14 = arith.select %9, %12, %13 : vector<8x128xi1>, vector<8x128xf32>
    %15 = arith.truncf %14 : vector<8x128xf32> to vector<8x128xbf16>
    %c0_4 = arith.constant 0 : index
    %c0_5 = arith.constant 0 : index
    %16 = vector.load %arg7[%c0_4, %c0_5] : memref<8x128xf32, #tpu.memory_space<vmem>>, vector<8x128xf32>
    %c0_6 = arith.constant 0 : index
    %c0_7 = arith.constant 0 : index
    %17 = vector.load %arg5[%c0_6, %c0_7] : memref<128x128xbf16, #tpu.memory_space<vmem>>, vector<128x128xbf16>
    %cst_8 = arith.constant dense<0.000000e+00> : vector<8x128xf32>
    %18 = tpu.matmul %15, %17, %cst_8 {dimension_numbers = #tpu.dot_dimension_numbers<[1], [0], [0], [1], [0, 0, 1, 1], [], []>} : vector<8x128xbf16>, vector<128x128xbf16>, vector<8x128xf32> -> vector<8x128xf32>
    %19 = arith.addf %16, %18 : vector<8x128xf32>
    %c0_9 = arith.constant 0 : index
    %c0_10 = arith.constant 0 : index
    %20 = vector.load %arg7[%c0_9, %c0_10] : memref<8x128xf32, #tpu.memory_space<vmem>>, vector<8x128xf32>
    tpu.vector_store %arg7[%c0_9, %c0_10], %19 {strides = array<i32>} : memref<8x128xf32, #tpu.memory_space<vmem>>, vector<8x128xf32>,
    %c0_i32_11 = arith.constant 0 : i32
    %21 = arith.cmpi eq, %arg1, %c0_i32_11 : i32
    %22 = arith.extui %21 : i1 to i32
    %c0_i32_12 = arith.constant 0 : i32
    %23 = arith.cmpi ne, %22, %c0_i32_12 : i32
    scf.if %23 {
      %c0_13 = arith.constant 0 : index
      %c0_14 = arith.constant 0 : index
      %24 = vector.load %arg7[%c0_13, %c0_14] : memref<8x128xf32, #tpu.memory_space<vmem>>, vector<8x128xf32>
      %c0_15 = arith.constant 0 : index
      %c0_16 = arith.constant 0 : index
      %25 = vector.load %arg6[%c0_15, %c0_16] : memref<8x128xf32, #tpu.memory_space<vmem>>, vector<8x128xf32>
      tpu.vector_store %arg6[%c0_15, %c0_16], %24 {strides = array<i32>} : memref<8x128xf32, #tpu.memory_space<vmem>>, vector<8x128xf32>,
    } else {
    }
    return
  }
  func.func @transform_0(%arg0: i32, %arg1: i32, %arg2: memref<2xi32, #tpu.memory_space<smem>>) -> (i32, i32) {
    %0 = arith.index_cast %arg0 : i32 to index
    %1 = memref.load %arg2[%0] : memref<2xi32, #tpu.memory_space<smem>>
    %2 = arith.addi %1, %arg1 : i32
    %c0_i32 = arith.constant 0 : i32
    %c0_i32_0 = arith.constant 0 : i32
    return %c0_i32, %2 : i32, i32
  }
  func.func @transform_1(%arg0: i32, %arg1: i32, %arg2: memref<2xi32, #tpu.memory_space<smem>>) -> (i32, i32) {
    %0 = arith.index_cast %arg0 : i32 to index
    %1 = memref.load %arg2[%0] : memref<2xi32, #tpu.memory_space<smem>>
    %2 = arith.addi %1, %arg1 : i32
    %c0_i32 = arith.constant 0 : i32
    %c0_i32_0 = arith.constant 0 : i32
    return %c0_i32, %2 : i32, i32
  }
  func.func @transform_2(%arg0: i32, %arg1: i32, %arg2: memref<2xi32, #tpu.memory_space<smem>>) -> (i32, i32) {
    %0 = arith.index_cast %arg0 : i32 to index
    %1 = memref.load %arg2[%0] : memref<2xi32, #tpu.memory_space<smem>>
    %2 = arith.addi %1, %arg1 : i32
    %c0_i32 = arith.constant 0 : i32
    %c0_i32_0 = arith.constant 0 : i32
    return %2, %c0_i32 : i32, i32
  }
  func.func @transform_3(%arg0: i32, %arg1: i32, %arg2: memref<2xi32, #tpu.memory_space<smem>>) -> (i32, i32) {
    %c0_i32 = arith.constant 0 : i32
    %c0_i32_0 = arith.constant 0 : i32
    return %arg0, %c0_i32 : i32, i32
  }
}

module attributes {stable_mosaic.version = 11 : i64} {
  func.func @_add_l2norm_kernel(%arg0: i32, %arg1: memref<8x128xf32, #tpu.memory_space<vmem>>, %arg2: memref<8x128xf32, #tpu.memory_space<vmem>>, %arg3: memref<8x128xf32, #tpu.memory_space<vmem>>) attributes {dimension_semantics = [#tpu.dimension_semantics<parallel>], iteration_bounds = array<i64: 1>, scalar_prefetch = 0 : i64, scratch_operands = 0 : i64, tpu.core_type = #tpu.core_type<tc>, window_params = [{transform_indices = @transform_0, window_bounds = array<i64: 8, 128>}, {transform_indices = @transform_1, window_bounds = array<i64: 8, 128>}, {transform_indices = @transform_2, window_bounds = array<i64: 8, 128>}]} {
    %c0 = arith.constant 0 : index
    %c0_0 = arith.constant 0 : index
    %0 = vector.load %arg1[%c0, %c0_0] : memref<8x128xf32, #tpu.memory_space<vmem>>, vector<8x128xf32>
    %c0_1 = arith.constant 0 : index
    %c0_2 = arith.constant 0 : index
    %1 = vector.load %arg2[%c0_1, %c0_2] : memref<8x128xf32, #tpu.memory_space<vmem>>, vector<8x128xf32>
    %2 = arith.addf %0, %1 : vector<8x128xf32>
    %3 = arith.mulf %2, %2 : vector<8x128xf32>
    %cst = arith.constant dense<0.000000e+00> : vector<8xf32>
    %4 = vector.multi_reduction <add>, %3, %cst [1] : vector<8x128xf32> to vector<8xf32>
    %5 = vector.shape_cast %4 : vector<8xf32> to vector<8x1xf32>
    %6 = math.sqrt %5 : vector<8x1xf32>
    %cst_3 = arith.constant 9.99999996E-13 : f32
    %7 = vector.broadcast %cst_3 : f32 to vector<8x1xf32>
    %8 = arith.maximumf %6, %7 : vector<8x1xf32>
    %9 = vector.broadcast %8 : vector<8x1xf32> to vector<8x128xf32>
    %10 = arith.divf %2, %9 : vector<8x128xf32>
    %c0_4 = arith.constant 0 : index
    %c0_5 = arith.constant 0 : index
    %11 = vector.load %arg3[%c0_4, %c0_5] : memref<8x128xf32, #tpu.memory_space<vmem>>, vector<8x128xf32>
    tpu.vector_store %arg3[%c0_4, %c0_5], %10 {strides = array<i32>} : memref<8x128xf32, #tpu.memory_space<vmem>>, vector<8x128xf32>,
    return
  }
  func.func @transform_0(%arg0: i32) -> (i32, i32) {
    %c0_i32 = arith.constant 0 : i32
    %c0_i32_0 = arith.constant 0 : i32
    return %arg0, %c0_i32 : i32, i32
  }
  func.func @transform_1(%arg0: i32) -> (i32, i32) {
    %c0_i32 = arith.constant 0 : i32
    %c0_i32_0 = arith.constant 0 : i32
    return %arg0, %c0_i32 : i32, i32
  }
  func.func @transform_2(%arg0: i32) -> (i32, i32) {
    %c0_i32 = arith.constant 0 : i32
    %c0_i32_0 = arith.constant 0 : i32
    return %arg0, %c0_i32 : i32, i32
  }
}

module attributes {stable_mosaic.version = 11 : i64} {
  func.func @_l2norm_kernel(%arg0: i32, %arg1: memref<8x128xf32, #tpu.memory_space<vmem>>, %arg2: memref<8x128xf32, #tpu.memory_space<vmem>>) attributes {dimension_semantics = [#tpu.dimension_semantics<parallel>], iteration_bounds = array<i64: 2>, scalar_prefetch = 0 : i64, scratch_operands = 0 : i64, tpu.core_type = #tpu.core_type<tc>, window_params = [{transform_indices = @transform_0, window_bounds = array<i64: 8, 128>}, {transform_indices = @transform_1, window_bounds = array<i64: 8, 128>}]} {
    %c0 = arith.constant 0 : index
    %c0_0 = arith.constant 0 : index
    %0 = vector.load %arg1[%c0, %c0_0] : memref<8x128xf32, #tpu.memory_space<vmem>>, vector<8x128xf32>
    %1 = arith.mulf %0, %0 : vector<8x128xf32>
    %cst = arith.constant dense<0.000000e+00> : vector<8xf32>
    %2 = vector.multi_reduction <add>, %1, %cst [1] : vector<8x128xf32> to vector<8xf32>
    %3 = vector.shape_cast %2 : vector<8xf32> to vector<8x1xf32>
    %4 = math.sqrt %3 : vector<8x1xf32>
    %cst_1 = arith.constant 9.99999996E-13 : f32
    %5 = vector.broadcast %cst_1 : f32 to vector<8x1xf32>
    %6 = arith.maximumf %4, %5 : vector<8x1xf32>
    %7 = vector.broadcast %6 : vector<8x1xf32> to vector<8x128xf32>
    %8 = arith.divf %0, %7 : vector<8x128xf32>
    %c0_2 = arith.constant 0 : index
    %c0_3 = arith.constant 0 : index
    %9 = vector.load %arg2[%c0_2, %c0_3] : memref<8x128xf32, #tpu.memory_space<vmem>>, vector<8x128xf32>
    tpu.vector_store %arg2[%c0_2, %c0_3], %8 {strides = array<i32>} : memref<8x128xf32, #tpu.memory_space<vmem>>, vector<8x128xf32>,
    return
  }
  func.func @transform_0(%arg0: i32) -> (i32, i32) {
    %c0_i32 = arith.constant 0 : i32
    %c0_i32_0 = arith.constant 0 : i32
    return %arg0, %c0_i32 : i32, i32
  }
  func.func @transform_1(%arg0: i32) -> (i32, i32) {
    %c0_i32 = arith.constant 0 : i32
    %c0_i32_0 = arith.constant 0 : i32
    return %arg0, %c0_i32 : i32, i32
  }
}

module attributes {stable_mosaic.version = 11 : i64} {
  func.func @_matmul_kernel(%arg0: i32, %arg1: i32, %arg2: i32, %arg3: memref<8x256xf32, #tpu.memory_space<vmem>>, %arg4: memref<256x128xf32, #tpu.memory_space<vmem>>, %arg5: memref<8x128xf32, #tpu.memory_space<vmem>>, %arg6: memref<8x128xf32, #tpu.memory_space<vmem>>) attributes {dimension_semantics = [#tpu.dimension_semantics<parallel>, #tpu.dimension_semantics<parallel>, #tpu.dimension_semantics<arbitrary>], iteration_bounds = array<i64: 2, 1, 1>, scalar_prefetch = 0 : i64, scratch_operands = 1 : i64, tpu.core_type = #tpu.core_type<tc>, window_params = [{transform_indices = @transform_0, window_bounds = array<i64: 8, 256>}, {transform_indices = @transform_1, window_bounds = array<i64: 256, 128>}, {transform_indices = @transform_2, window_bounds = array<i64: 8, 128>}]} {
    %c0_i32 = arith.constant 0 : i32
    %0 = arith.cmpi eq, %arg2, %c0_i32 : i32
    %1 = arith.extui %0 : i1 to i32
    %c0_i32_0 = arith.constant 0 : i32
    %2 = arith.cmpi ne, %1, %c0_i32_0 : i32
    scf.if %2 {
      %cst_10 = arith.constant 0.000000e+00 : f32
      %14 = vector.broadcast %cst_10 : f32 to vector<8x128xf32>
      %c0_11 = arith.constant 0 : index
      %c0_12 = arith.constant 0 : index
      %15 = vector.load %arg6[%c0_11, %c0_12] : memref<8x128xf32, #tpu.memory_space<vmem>>, vector<8x128xf32>
      tpu.vector_store %arg6[%c0_11, %c0_12], %14 {strides = array<i32>} : memref<8x128xf32, #tpu.memory_space<vmem>>, vector<8x128xf32>,
    } else {
    }
    %c0 = arith.constant 0 : index
    %c0_1 = arith.constant 0 : index
    %3 = vector.load %arg6[%c0, %c0_1] : memref<8x128xf32, #tpu.memory_space<vmem>>, vector<8x128xf32>
    %c0_2 = arith.constant 0 : index
    %c0_3 = arith.constant 0 : index
    %4 = vector.load %arg3[%c0_2, %c0_3] : memref<8x256xf32, #tpu.memory_space<vmem>>, vector<8x256xf32>
    %5 = arith.truncf %4 : vector<8x256xf32> to vector<8x256xbf16>
    %c0_4 = arith.constant 0 : index
    %c0_5 = arith.constant 0 : index
    %6 = vector.load %arg4[%c0_4, %c0_5] : memref<256x128xf32, #tpu.memory_space<vmem>>, vector<256x128xf32>
    %7 = arith.truncf %6 : vector<256x128xf32> to vector<256x128xbf16>
    %cst = arith.constant dense<0.000000e+00> : vector<8x128xf32>
    %8 = tpu.matmul %5, %7, %cst {dimension_numbers = #tpu.dot_dimension_numbers<[1], [0], [0], [1], [0, 0, 1, 1], [], []>} : vector<8x256xbf16>, vector<256x128xbf16>, vector<8x128xf32> -> vector<8x128xf32>
    %9 = arith.addf %3, %8 : vector<8x128xf32>
    %c0_6 = arith.constant 0 : index
    %c0_7 = arith.constant 0 : index
    %10 = vector.load %arg6[%c0_6, %c0_7] : memref<8x128xf32, #tpu.memory_space<vmem>>, vector<8x128xf32>
    tpu.vector_store %arg6[%c0_6, %c0_7], %9 {strides = array<i32>} : memref<8x128xf32, #tpu.memory_space<vmem>>, vector<8x128xf32>,
    %c0_i32_8 = arith.constant 0 : i32
    %11 = arith.cmpi eq, %arg2, %c0_i32_8 : i32
    %12 = arith.extui %11 : i1 to i32
    %c0_i32_9 = arith.constant 0 : i32
    %13 = arith.cmpi ne, %12, %c0_i32_9 : i32
    scf.if %13 {
      %c0_10 = arith.constant 0 : index
      %c0_11 = arith.constant 0 : index
      %14 = vector.load %arg6[%c0_10, %c0_11] : memref<8x128xf32, #tpu.memory_space<vmem>>, vector<8x128xf32>
      %cst_12 = arith.constant 0.000000e+00 : f32
      %15 = vector.broadcast %cst_12 : f32 to vector<8x128xf32>
      %16 = arith.cmpf ogt, %14, %15 : vector<8x128xf32>
      %cst_13 = arith.constant 0.00999999977 : f32
      %17 = vector.broadcast %cst_13 : f32 to vector<8x128xf32>
      %18 = arith.mulf %17, %14 : vector<8x128xf32>
      %19 = arith.select %16, %14, %18 : vector<8x128xi1>, vector<8x128xf32>
      %c0_14 = arith.constant 0 : index
      %c0_15 = arith.constant 0 : index
      %20 = vector.load %arg5[%c0_14, %c0_15] : memref<8x128xf32, #tpu.memory_space<vmem>>, vector<8x128xf32>
      tpu.vector_store %arg5[%c0_14, %c0_15], %19 {strides = array<i32>} : memref<8x128xf32, #tpu.memory_space<vmem>>, vector<8x128xf32>,
    } else {
    }
    return
  }
  func.func @transform_0(%arg0: i32, %arg1: i32, %arg2: i32) -> (i32, i32) {
    %c0_i32 = arith.constant 0 : i32
    return %arg0, %arg2 : i32, i32
  }
  func.func @transform_1(%arg0: i32, %arg1: i32, %arg2: i32) -> (i32, i32) {
    %c0_i32 = arith.constant 0 : i32
    return %arg2, %arg1 : i32, i32
  }
  func.func @transform_2(%arg0: i32, %arg1: i32, %arg2: i32) -> (i32, i32) {
    %c0_i32 = arith.constant 0 : i32
    return %arg0, %arg1 : i32, i32
  }
}

module attributes {stable_mosaic.version = 11 : i64} {
  func.func @_spmm_kernel(%arg0: i32, %arg1: i32, %arg2: memref<2xi32, #tpu.memory_space<smem>>, %arg3: memref<1x128xi32, #tpu.memory_space<vmem>>, %arg4: memref<1x128xf32, #tpu.memory_space<vmem>>, %arg5: memref<128x128xbf16, #tpu.memory_space<vmem>>, %arg6: memref<8x128xf32, #tpu.memory_space<vmem>>, %arg7: memref<8x128xf32, #tpu.memory_space<vmem>>, %arg8: memref<8x128xf32, #tpu.memory_space<vmem>>) attributes {dimension_semantics = [#tpu.dimension_semantics<parallel>, #tpu.dimension_semantics<arbitrary>], iteration_bounds = array<i64: 2, 1>, scalar_prefetch = 1 : i64, scratch_operands = 1 : i64, tpu.core_type = #tpu.core_type<tc>, window_params = [{transform_indices = @transform_0, window_bounds = array<i64: 1, 128>}, {transform_indices = @transform_1, window_bounds = array<i64: 1, 128>}, {transform_indices = @transform_2, window_bounds = array<i64: 128, 128>}, {transform_indices = @transform_3, window_bounds = array<i64: 8, 128>}, {transform_indices = @transform_4, window_bounds = array<i64: 8, 128>}]} {
    %c0_i32 = arith.constant 0 : i32
    %0 = arith.cmpi eq, %arg1, %c0_i32 : i32
    %1 = arith.extui %0 : i1 to i32
    %c0_i32_0 = arith.constant 0 : i32
    %2 = arith.cmpi ne, %1, %c0_i32_0 : i32
    scf.if %2 {
      %cst_13 = arith.constant 0.000000e+00 : f32
      %24 = vector.broadcast %cst_13 : f32 to vector<8x128xf32>
      %c0_14 = arith.constant 0 : index
      %c0_15 = arith.constant 0 : index
      %25 = vector.load %arg8[%c0_14, %c0_15] : memref<8x128xf32, #tpu.memory_space<vmem>>, vector<8x128xf32>
      tpu.vector_store %arg8[%c0_14, %c0_15], %24 {strides = array<i32>} : memref<8x128xf32, #tpu.memory_space<vmem>>, vector<8x128xf32>,
    } else {
    }
    %c8_i32 = arith.constant 8 : i32
    %3 = arith.muli %arg0, %c8_i32 : i32
    %4 = tpu.iota {dimensions = array<i32: 0>} : vector<8x128xi32>
    %5 = vector.broadcast %3 : i32 to vector<8x128xi32>
    %6 = arith.addi %4, %5 : vector<8x128xi32>
    %c0 = arith.constant 0 : index
    %c0_1 = arith.constant 0 : index
    %7 = vector.load %arg3[%c0, %c0_1] : memref<1x128xi32, #tpu.memory_space<vmem>>, vector<1x128xi32>
    %8 = vector.broadcast %7 : vector<1x128xi32> to vector<8x128xi32>
    %9 = arith.cmpi eq, %6, %8 : vector<8x128xi32>
    %c0_2 = arith.constant 0 : index
    %c0_3 = arith.constant 0 : index
    %10 = vector.load %arg4[%c0_2, %c0_3] : memref<1x128xf32, #tpu.memory_space<vmem>>, vector<1x128xf32>
    %cst = arith.constant 0.000000e+00 : f32
    %11 = vector.shape_cast %10 : vector<1x128xf32> to vector<1x128xf32>
    %12 = vector.broadcast %11 : vector<1x128xf32> to vector<8x128xf32>
    %13 = vector.broadcast %cst : f32 to vector<8x128xf32>
    %14 = arith.select %9, %12, %13 : vector<8x128xi1>, vector<8x128xf32>
    %15 = arith.truncf %14 : vector<8x128xf32> to vector<8x128xbf16>
    %c0_4 = arith.constant 0 : index
    %c0_5 = arith.constant 0 : index
    %16 = vector.load %arg8[%c0_4, %c0_5] : memref<8x128xf32, #tpu.memory_space<vmem>>, vector<8x128xf32>
    %c0_6 = arith.constant 0 : index
    %c0_7 = arith.constant 0 : index
    %17 = vector.load %arg5[%c0_6, %c0_7] : memref<128x128xbf16, #tpu.memory_space<vmem>>, vector<128x128xbf16>
    %cst_8 = arith.constant dense<0.000000e+00> : vector<8x128xf32>
    %18 = tpu.matmul %15, %17, %cst_8 {dimension_numbers = #tpu.dot_dimension_numbers<[1], [0], [0], [1], [0, 0, 1, 1], [], []>} : vector<8x128xbf16>, vector<128x128xbf16>, vector<8x128xf32> -> vector<8x128xf32>
    %19 = arith.addf %16, %18 : vector<8x128xf32>
    %c0_9 = arith.constant 0 : index
    %c0_10 = arith.constant 0 : index
    %20 = vector.load %arg8[%c0_9, %c0_10] : memref<8x128xf32, #tpu.memory_space<vmem>>, vector<8x128xf32>
    tpu.vector_store %arg8[%c0_9, %c0_10], %19 {strides = array<i32>} : memref<8x128xf32, #tpu.memory_space<vmem>>, vector<8x128xf32>,
    %c0_i32_11 = arith.constant 0 : i32
    %21 = arith.cmpi eq, %arg1, %c0_i32_11 : i32
    %22 = arith.extui %21 : i1 to i32
    %c0_i32_12 = arith.constant 0 : i32
    %23 = arith.cmpi ne, %22, %c0_i32_12 : i32
    scf.if %23 {
      %c0_13 = arith.constant 0 : index
      %c0_14 = arith.constant 0 : index
      %24 = vector.load %arg8[%c0_13, %c0_14] : memref<8x128xf32, #tpu.memory_space<vmem>>, vector<8x128xf32>
      %cst_15 = arith.constant 0.000000e+00 : f32
      %25 = vector.broadcast %cst_15 : f32 to vector<8x128xf32>
      %26 = arith.cmpf ogt, %24, %25 : vector<8x128xf32>
      %cst_16 = arith.constant 0.00999999977 : f32
      %27 = vector.broadcast %cst_16 : f32 to vector<8x128xf32>
      %28 = arith.mulf %27, %24 : vector<8x128xf32>
      %29 = arith.select %26, %24, %28 : vector<8x128xi1>, vector<8x128xf32>
      %c0_17 = arith.constant 0 : index
      %c0_18 = arith.constant 0 : index
      %30 = vector.load %arg6[%c0_17, %c0_18] : memref<8x128xf32, #tpu.memory_space<vmem>>, vector<8x128xf32>
      %31 = arith.addf %29, %30 : vector<8x128xf32>
      %c0_19 = arith.constant 0 : index
      %c0_20 = arith.constant 0 : index
      %32 = vector.load %arg7[%c0_19, %c0_20] : memref<8x128xf32, #tpu.memory_space<vmem>>, vector<8x128xf32>
      tpu.vector_store %arg7[%c0_19, %c0_20], %31 {strides = array<i32>} : memref<8x128xf32, #tpu.memory_space<vmem>>, vector<8x128xf32>,
    } else {
    }
    return
  }
  func.func @transform_0(%arg0: i32, %arg1: i32, %arg2: memref<2xi32, #tpu.memory_space<smem>>) -> (i32, i32) {
    %0 = arith.index_cast %arg0 : i32 to index
    %1 = memref.load %arg2[%0] : memref<2xi32, #tpu.memory_space<smem>>
    %2 = arith.addi %1, %arg1 : i32
    %c0_i32 = arith.constant 0 : i32
    %c0_i32_0 = arith.constant 0 : i32
    return %c0_i32, %2 : i32, i32
  }
  func.func @transform_1(%arg0: i32, %arg1: i32, %arg2: memref<2xi32, #tpu.memory_space<smem>>) -> (i32, i32) {
    %0 = arith.index_cast %arg0 : i32 to index
    %1 = memref.load %arg2[%0] : memref<2xi32, #tpu.memory_space<smem>>
    %2 = arith.addi %1, %arg1 : i32
    %c0_i32 = arith.constant 0 : i32
    %c0_i32_0 = arith.constant 0 : i32
    return %c0_i32, %2 : i32, i32
  }
  func.func @transform_2(%arg0: i32, %arg1: i32, %arg2: memref<2xi32, #tpu.memory_space<smem>>) -> (i32, i32) {
    %0 = arith.index_cast %arg0 : i32 to index
    %1 = memref.load %arg2[%0] : memref<2xi32, #tpu.memory_space<smem>>
    %2 = arith.addi %1, %arg1 : i32
    %c0_i32 = arith.constant 0 : i32
    %c0_i32_0 = arith.constant 0 : i32
    return %2, %c0_i32 : i32, i32
  }
  func.func @transform_3(%arg0: i32, %arg1: i32, %arg2: memref<2xi32, #tpu.memory_space<smem>>) -> (i32, i32) {
    %c0_i32 = arith.constant 0 : i32
    %c0_i32_0 = arith.constant 0 : i32
    return %arg0, %c0_i32 : i32, i32
  }
  func.func @transform_4(%arg0: i32, %arg1: i32, %arg2: memref<2xi32, #tpu.memory_space<smem>>) -> (i32, i32) {
    %c0_i32 = arith.constant 0 : i32
    %c0_i32_0 = arith.constant 0 : i32
    return %arg0, %c0_i32 : i32, i32
  }
}

module attributes {stable_mosaic.version = 11 : i64} {
  func.func @_matmul_kernel(%arg0: i32, %arg1: i32, %arg2: i32, %arg3: memref<8x256xf32, #tpu.memory_space<vmem>>, %arg4: memref<256x128xf32, #tpu.memory_space<vmem>>, %arg5: memref<8x128xf32, #tpu.memory_space<vmem>>, %arg6: memref<8x128xf32, #tpu.memory_space<vmem>>, %arg7: memref<8x128xf32, #tpu.memory_space<vmem>>) attributes {dimension_semantics = [#tpu.dimension_semantics<parallel>, #tpu.dimension_semantics<parallel>, #tpu.dimension_semantics<arbitrary>], iteration_bounds = array<i64: 2, 1, 1>, scalar_prefetch = 0 : i64, scratch_operands = 1 : i64, tpu.core_type = #tpu.core_type<tc>, window_params = [{transform_indices = @transform_0, window_bounds = array<i64: 8, 256>}, {transform_indices = @transform_1, window_bounds = array<i64: 256, 128>}, {transform_indices = @transform_2, window_bounds = array<i64: 8, 128>}, {transform_indices = @transform_3, window_bounds = array<i64: 8, 128>}]} {
    %c0_i32 = arith.constant 0 : i32
    %0 = arith.cmpi eq, %arg2, %c0_i32 : i32
    %1 = arith.extui %0 : i1 to i32
    %c0_i32_0 = arith.constant 0 : i32
    %2 = arith.cmpi ne, %1, %c0_i32_0 : i32
    scf.if %2 {
      %cst_10 = arith.constant 0.000000e+00 : f32
      %14 = vector.broadcast %cst_10 : f32 to vector<8x128xf32>
      %c0_11 = arith.constant 0 : index
      %c0_12 = arith.constant 0 : index
      %15 = vector.load %arg7[%c0_11, %c0_12] : memref<8x128xf32, #tpu.memory_space<vmem>>, vector<8x128xf32>
      tpu.vector_store %arg7[%c0_11, %c0_12], %14 {strides = array<i32>} : memref<8x128xf32, #tpu.memory_space<vmem>>, vector<8x128xf32>,
    } else {
    }
    %c0 = arith.constant 0 : index
    %c0_1 = arith.constant 0 : index
    %3 = vector.load %arg7[%c0, %c0_1] : memref<8x128xf32, #tpu.memory_space<vmem>>, vector<8x128xf32>
    %c0_2 = arith.constant 0 : index
    %c0_3 = arith.constant 0 : index
    %4 = vector.load %arg3[%c0_2, %c0_3] : memref<8x256xf32, #tpu.memory_space<vmem>>, vector<8x256xf32>
    %5 = arith.truncf %4 : vector<8x256xf32> to vector<8x256xbf16>
    %c0_4 = arith.constant 0 : index
    %c0_5 = arith.constant 0 : index
    %6 = vector.load %arg4[%c0_4, %c0_5] : memref<256x128xf32, #tpu.memory_space<vmem>>, vector<256x128xf32>
    %7 = arith.truncf %6 : vector<256x128xf32> to vector<256x128xbf16>
    %cst = arith.constant dense<0.000000e+00> : vector<8x128xf32>
    %8 = tpu.matmul %5, %7, %cst {dimension_numbers = #tpu.dot_dimension_numbers<[1], [0], [0], [1], [0, 0, 1, 1], [], []>} : vector<8x256xbf16>, vector<256x128xbf16>, vector<8x128xf32> -> vector<8x128xf32>
    %9 = arith.addf %3, %8 : vector<8x128xf32>
    %c0_6 = arith.constant 0 : index
    %c0_7 = arith.constant 0 : index
    %10 = vector.load %arg7[%c0_6, %c0_7] : memref<8x128xf32, #tpu.memory_space<vmem>>, vector<8x128xf32>
    tpu.vector_store %arg7[%c0_6, %c0_7], %9 {strides = array<i32>} : memref<8x128xf32, #tpu.memory_space<vmem>>, vector<8x128xf32>,
    %c0_i32_8 = arith.constant 0 : i32
    %11 = arith.cmpi eq, %arg2, %c0_i32_8 : i32
    %12 = arith.extui %11 : i1 to i32
    %c0_i32_9 = arith.constant 0 : i32
    %13 = arith.cmpi ne, %12, %c0_i32_9 : i32
    scf.if %13 {
      %c0_10 = arith.constant 0 : index
      %c0_11 = arith.constant 0 : index
      %14 = vector.load %arg7[%c0_10, %c0_11] : memref<8x128xf32, #tpu.memory_space<vmem>>, vector<8x128xf32>
      %cst_12 = arith.constant 0.000000e+00 : f32
      %15 = vector.broadcast %cst_12 : f32 to vector<8x128xf32>
      %16 = arith.cmpf ogt, %14, %15 : vector<8x128xf32>
      %cst_13 = arith.constant 0.00999999977 : f32
      %17 = vector.broadcast %cst_13 : f32 to vector<8x128xf32>
      %18 = arith.mulf %17, %14 : vector<8x128xf32>
      %19 = arith.select %16, %14, %18 : vector<8x128xi1>, vector<8x128xf32>
      %c0_14 = arith.constant 0 : index
      %c0_15 = arith.constant 0 : index
      %20 = vector.load %arg5[%c0_14, %c0_15] : memref<8x128xf32, #tpu.memory_space<vmem>>, vector<8x128xf32>
      %21 = arith.addf %19, %20 : vector<8x128xf32>
      %c0_16 = arith.constant 0 : index
      %c0_17 = arith.constant 0 : index
      %22 = vector.load %arg6[%c0_16, %c0_17] : memref<8x128xf32, #tpu.memory_space<vmem>>, vector<8x128xf32>
      tpu.vector_store %arg6[%c0_16, %c0_17], %21 {strides = array<i32>} : memref<8x128xf32, #tpu.memory_space<vmem>>, vector<8x128xf32>,
    } else {
    }
    return
  }
  func.func @transform_0(%arg0: i32, %arg1: i32, %arg2: i32) -> (i32, i32) {
    %c0_i32 = arith.constant 0 : i32
    return %arg0, %arg2 : i32, i32
  }
  func.func @transform_1(%arg0: i32, %arg1: i32, %arg2: i32) -> (i32, i32) {
    %c0_i32 = arith.constant 0 : i32
    return %arg2, %arg1 : i32, i32
  }
  func.func @transform_2(%arg0: i32, %arg1: i32, %arg2: i32) -> (i32, i32) {
    %c0_i32 = arith.constant 0 : i32
    return %arg0, %arg1 : i32, i32
  }
  func.func @transform_3(%arg0: i32, %arg1: i32, %arg2: i32) -> (i32, i32) {
    %c0_i32 = arith.constant 0 : i32
    return %arg0, %arg1 : i32, i32
  }
}

module attributes {stable_mosaic.version = 11 : i64} {
  func.func @_matmul_kernel(%arg0: i32, %arg1: i32, %arg2: i32, %arg3: memref<8x128xf32, #tpu.memory_space<vmem>>, %arg4: memref<128x128xf32, #tpu.memory_space<vmem>>, %arg5: memref<8x128xf32, #tpu.memory_space<vmem>>, %arg6: memref<8x128xf32, #tpu.memory_space<vmem>>) attributes {dimension_semantics = [#tpu.dimension_semantics<parallel>, #tpu.dimension_semantics<parallel>, #tpu.dimension_semantics<arbitrary>], iteration_bounds = array<i64: 1, 1, 1>, scalar_prefetch = 0 : i64, scratch_operands = 1 : i64, tpu.core_type = #tpu.core_type<tc>, window_params = [{transform_indices = @transform_0, window_bounds = array<i64: 8, 128>}, {transform_indices = @transform_1, window_bounds = array<i64: 128, 128>}, {transform_indices = @transform_2, window_bounds = array<i64: 8, 128>}]} {
    %c0_i32 = arith.constant 0 : i32
    %0 = arith.cmpi eq, %arg2, %c0_i32 : i32
    %1 = arith.extui %0 : i1 to i32
    %c0_i32_0 = arith.constant 0 : i32
    %2 = arith.cmpi ne, %1, %c0_i32_0 : i32
    scf.if %2 {
      %cst_10 = arith.constant 0.000000e+00 : f32
      %14 = vector.broadcast %cst_10 : f32 to vector<8x128xf32>
      %c0_11 = arith.constant 0 : index
      %c0_12 = arith.constant 0 : index
      %15 = vector.load %arg6[%c0_11, %c0_12] : memref<8x128xf32, #tpu.memory_space<vmem>>, vector<8x128xf32>
      tpu.vector_store %arg6[%c0_11, %c0_12], %14 {strides = array<i32>} : memref<8x128xf32, #tpu.memory_space<vmem>>, vector<8x128xf32>,
    } else {
    }
    %c0 = arith.constant 0 : index
    %c0_1 = arith.constant 0 : index
    %3 = vector.load %arg6[%c0, %c0_1] : memref<8x128xf32, #tpu.memory_space<vmem>>, vector<8x128xf32>
    %c0_2 = arith.constant 0 : index
    %c0_3 = arith.constant 0 : index
    %4 = vector.load %arg3[%c0_2, %c0_3] : memref<8x128xf32, #tpu.memory_space<vmem>>, vector<8x128xf32>
    %5 = arith.truncf %4 : vector<8x128xf32> to vector<8x128xbf16>
    %c0_4 = arith.constant 0 : index
    %c0_5 = arith.constant 0 : index
    %6 = vector.load %arg4[%c0_4, %c0_5] : memref<128x128xf32, #tpu.memory_space<vmem>>, vector<128x128xf32>
    %7 = arith.truncf %6 : vector<128x128xf32> to vector<128x128xbf16>
    %cst = arith.constant dense<0.000000e+00> : vector<8x128xf32>
    %8 = tpu.matmul %5, %7, %cst {dimension_numbers = #tpu.dot_dimension_numbers<[1], [0], [0], [1], [0, 0, 1, 1], [], []>} : vector<8x128xbf16>, vector<128x128xbf16>, vector<8x128xf32> -> vector<8x128xf32>
    %9 = arith.addf %3, %8 : vector<8x128xf32>
    %c0_6 = arith.constant 0 : index
    %c0_7 = arith.constant 0 : index
    %10 = vector.load %arg6[%c0_6, %c0_7] : memref<8x128xf32, #tpu.memory_space<vmem>>, vector<8x128xf32>
    tpu.vector_store %arg6[%c0_6, %c0_7], %9 {strides = array<i32>} : memref<8x128xf32, #tpu.memory_space<vmem>>, vector<8x128xf32>,
    %c0_i32_8 = arith.constant 0 : i32
    %11 = arith.cmpi eq, %arg2, %c0_i32_8 : i32
    %12 = arith.extui %11 : i1 to i32
    %c0_i32_9 = arith.constant 0 : i32
    %13 = arith.cmpi ne, %12, %c0_i32_9 : i32
    scf.if %13 {
      %c0_10 = arith.constant 0 : index
      %c0_11 = arith.constant 0 : index
      %14 = vector.load %arg6[%c0_10, %c0_11] : memref<8x128xf32, #tpu.memory_space<vmem>>, vector<8x128xf32>
      %c0_12 = arith.constant 0 : index
      %c0_13 = arith.constant 0 : index
      %15 = vector.load %arg5[%c0_12, %c0_13] : memref<8x128xf32, #tpu.memory_space<vmem>>, vector<8x128xf32>
      tpu.vector_store %arg5[%c0_12, %c0_13], %14 {strides = array<i32>} : memref<8x128xf32, #tpu.memory_space<vmem>>, vector<8x128xf32>,
    } else {
    }
    return
  }
  func.func @transform_0(%arg0: i32, %arg1: i32, %arg2: i32) -> (i32, i32) {
    %c0_i32 = arith.constant 0 : i32
    return %arg0, %arg2 : i32, i32
  }
  func.func @transform_1(%arg0: i32, %arg1: i32, %arg2: i32) -> (i32, i32) {
    %c0_i32 = arith.constant 0 : i32
    return %arg2, %arg1 : i32, i32
  }
  func.func @transform_2(%arg0: i32, %arg1: i32, %arg2: i32) -> (i32, i32) {
    %c0_i32 = arith.constant 0 : i32
    return %arg0, %arg1 : i32, i32
  }
}

</mosaic_0001>

<bundles_post_ra>
// kernel: net_forward.30
= control target key start
LH: loop header
LB: loop body
LE: loop exit
PB: predicated region body
PF: predicated region fallthrough
CT: control target
= control target key end

     0   :  { %s65_s0 = inlined_call_operand.vmem [shape: f32[8,128], index: 0, kind: input, shape index: {}]   ;;  %s66_s1 = inlined_call_operand.vmem [shape: f32[8,128], index: 1, kind: output, shape index: {}]  }
   0x1   :  { %v8_v0 = vld [vmem:[%s65_s0] sm:$0xff] }
   0x2   :  { %v9_v1 = vmul.f32 %v8_v0, %v8_v0 }
   0x4   :  { %10 = vadd.xlane.f32.xlu0 %v9_v1 }
  0x77   :  { %v11_v2 = vpop.xlane.xlu0 %10 }
  0x78   :  { %45 = vrsqrt.f32 %v11_v2  ;;  %vm19_vm0 = vcmp.eq.f32.partialorder %v11_v2, inf  ;;  %v22_v10 = vand.u32 2147483648, %v11_v2  ;;  %vm21_vm1 = vcmp.eq.f32.partialorder %v11_v2, 0.0 }
  0x7e   :  { %v46_v3 = vpop.eup %45 }
  0x7f   :  { %v13_v4 = vmul.f32 %v46_v3, %v11_v2 }
  0x81   :  { %v14_v5 = vmul.f32 %v46_v3, %v13_v4 }
  0x83   :  { %v15_v6 = vmul.f32 0.5, %v14_v5 }
  0x85   :  { %v16_v7 = vsub.f32 1.5, %v15_v6 }
  0x87   :  { %v17_v8 = vmul.f32 %v46_v3, %v16_v7 }
  0x89   :  { %v18_v9 = vmul.f32 %v17_v8, %v11_v2 }
  0x8b   :  { %v20_v11 = vsel %vm19_vm0, %v11_v2, %v18_v9 }
  0x8c   :  { %v23_v12 = vsel %vm21_vm1, %v22_v10, %v20_v11 }
  0x8d   :  { %v24_v13 = vmax.f32 %v23_v12, 1e-12 }
  0x8f   :  { %47 = vrcp.f32 %v24_v13  ;;  %v36_v17 = vand.u32 2147483648, %v24_v13  ;;  %v34_v19 = vand.u32 2147483647, %v24_v13  ;;  %vm30_vm3 = vweird.f32 %v24_v13 }
  0x91   :  { %v37_v21 = vor.u32 1.1754944e-38, %v36_v17  ;;  %vm35_vm5 = vcmp.eq.f32.partialorder %v34_v19, 8.507059e+37 }
  0x95   :  { %v48_v14 = vpop.eup %47 }
  0x96   :  { %v26_v15 = vmul.f32 %v48_v14, %v24_v13  ;;  %vm31_vm2 = vweird.f32 %v48_v14 }
  0x97   :  { %vm32_vm4 = vmor %vm30_vm3, %vm31_vm2 }
  0x98   :  { %v27_v16 = vsub.f32 1.0, %v26_v15 }
  0x9a   :  { %v28_v18 = vmul.f32 %v48_v14, %v27_v16 }
  0x9c   :  { %v29_v20 = vadd.f32 %v48_v14, %v28_v18 }
  0x9e   :  { %v33_v22 = vsel %vm32_vm4, %v48_v14, %v29_v20 }
  0x9f   :  { %v38_v23 = vsel %vm35_vm5, %v37_v21, %v33_v22 }
  0xa0   :  { %v39_v24 = vmul.f32 %v38_v23, %v8_v0 }
  0xa2   :  { %40 = vst [vmem:[%s66_s1] sm:$0xff] %v39_v24 }

// kernel: net_forward.28
= control target key start
LH: loop header
LB: loop body
LE: loop exit
PB: predicated region body
PF: predicated region fallthrough
CT: control target
= control target key end

     0   :  { %s139_s1 = inlined_call_operand.vmem [shape: f32[128,128], index: 1, kind: input, shape index: {}]   ;;  %s140_s0 = inlined_call_operand.vmem [shape: f32[8,128], index: 0, kind: input, shape index: {}]   ;;  %s141_s2 = inlined_call_operand.vmem [shape: f32[8,128], index: 2, kind: output, shape index: {}]  }
   0x1   :  { %v33_v0 = vld [vmem:[%s139_s1 + $0x70] sm:$0xff]  ;;  %v34_v1 = vld [vmem:[%s139_s1 + $0x78] sm:$0xff]  ;;  %v31_v2 = vld [vmem:[%s139_s1 + $0x60] sm:$0xff] }
   0x2   :  { %v42_v3 = vpack.c.bf16 %v34_v1, %v33_v0  ;;  %v32_v4 = vld [vmem:[%s139_s1 + $0x68] sm:$0xff]  ;;  %v29_v6 = vld [vmem:[%s139_s1 + $0x50] sm:$0xff]  ;;  %v30_v7 = vld [vmem:[%s139_s1 + $0x58] sm:$0xff] }
   0x3   :  { %v41_v5 = vpack.c.bf16 %v32_v4, %v31_v2  ;;  %v40_v8 = vpack.c.bf16 %v30_v7, %v29_v6  ;;  %v27_v9 = vld [vmem:[%s139_s1 + $0x40] sm:$0xff]  ;;  %v28_v10 = vld [vmem:[%s139_s1 + $0x48] sm:$0xff]  ;;  %v25_v12 = vld [vmem:[%s139_s1 + $0x30] sm:$0xff] }
   0x4   :  { %43 = vmatpush.bf16.msra.mxu0 %v42_v3  ;;  %v39_v11 = vpack.c.bf16 %v28_v10, %v27_v9  ;;  %v26_v13 = vld [vmem:[%s139_s1 + $0x38] sm:$0xff]  ;;  %v23_v15 = vld [vmem:[%s139_s1 + $0x20] sm:$0xff]  ;;  %v24_v16 = vld [vmem:[%s139_s1 + $0x28] sm:$0xff] }
   0x5   :  { %v38_v14 = vpack.c.bf16 %v26_v13, %v25_v12  ;;  %v37_v17 = vpack.c.bf16 %v24_v16, %v23_v15  ;;  %v21_v18 = vld [vmem:[%s139_s1 + $0x10] sm:$0xff]  ;;  %v22_v19 = vld [vmem:[%s139_s1 + $0x18] sm:$0xff]  ;;  %v19_v21 = vld [vmem:[%s139_s1] sm:$0xff] }
   0x6   :  { %v36_v20 = vpack.c.bf16 %v22_v19, %v21_v18  ;;  %v20_v22 = vld [vmem:[%s139_s1 + $0x8] sm:$0xff]  ;;  %v17_v24 = vld [vmem:[%s140_s0] sm:$0xff] }
   0x7   :  { %v35_v23 = vpack.c.bf16 %v20_v22, %v19_v21  ;;  %v18_v25 = vpack.c.bf16 %v17_v24, %v17_v24 }
   0x8   :  { %44 = vmatpush.bf16.msra.mxu0 %v41_v5 }
   0xc   :  { %45 = vmatpush.bf16.msra.mxu0 %v40_v8 }
  0x10   :  { %46 = vmatpush.bf16.msra.mxu0 %v39_v11 }
  0x14   :  { %47 = vmatpush.bf16.msra.mxu0 %v38_v14 }
  0x18   :  { %48 = vmatpush.bf16.msra.mxu0 %v37_v17 }
  0x1c   :  { %49 = vmatpush.bf16.msra.mxu0 %v36_v20 }
  0x20   :  { %50 = vmatpush.bf16.msra.mxu0 %v35_v23 }
  0x23   :  { %51 = vmatmul.bf16.vlgmr.msra.gmra.mxu0 %v18_v25 }
  0xa0   :  { %v52_v26 = vpop.f32.mrf.mxu0 }
  0xa1   :  { %vm62_vm0 = vcmp.gt.f32.partialorder %v52_v26, 0.0  ;;  %v63_v27 = vmul.f32 0.01, %v52_v26 }
  0xa3   :  { %v64_v28 = vsel %vm62_vm0, %v52_v26, %v63_v27 }
  0xa4   :  { %65 = vst [vmem:[%s141_s2] sm:$0xff] %v64_v28 }
  0xa8   :  { %v54_v29 = vpop.f32.mrf.mxu0 }

// kernel: net_forward.31
= control target key start
LH: loop header
LB: loop body
LE: loop exit
PB: predicated region body
PF: predicated region fallthrough
CT: control target
= control target key end

     0   :  { %s199_s0 = inlined_call_operand.vmem [shape: f32[128,128], index: 0, kind: input, shape index: {}]   ;;  %s200_s1 = inlined_call_operand.vmem [shape: f32[128,128], index: 1, kind: input, shape index: {}]   ;;  %s201_s2 = inlined_call_operand.vmem [shape: f32[1,128], index: 2, kind: output, shape index: {}]  }
   0x1   :  { %v11_v0 = vld [vmem:[%s199_s0] sm:$0xff]  ;;  %v12_v1 = vld [vmem:[%s199_s0 + $0x8] sm:$0xff]  ;;  %v13_v2 = vld [vmem:[%s199_s0 + $0x10] sm:$0xff] }
   0x2   :  { %v14_v3 = vld [vmem:[%s199_s0 + $0x18] sm:$0xff]  ;;  %v27_v4 = vld [vmem:[%s200_s1] sm:$0xff]  ;;  %v28_v5 = vld [vmem:[%s200_s1 + $0x8] sm:$0xff] }
   0x3   :  { %v29_v6 = vld [vmem:[%s200_s1 + $0x10] sm:$0xff]  ;;  %v30_v7 = vld [vmem:[%s200_s1 + $0x18] sm:$0xff]  ;;  %v43_v8 = vmul.f32 %v27_v4, %v11_v0  ;;  %v44_v9 = vmul.f32 %v28_v5, %v12_v1  ;;  %v15_v10 = vld [vmem:[%s199_s0 + $0x20] sm:$0xff] }
   0x4   :  { %v31_v11 = vld [vmem:[%s200_s1 + $0x20] sm:$0xff]  ;;  %v45_v12 = vmul.f32 %v29_v6, %v13_v2  ;;  %v46_v13 = vmul.f32 %v30_v7, %v14_v3  ;;  %v16_v15 = vld [vmem:[%s199_s0 + $0x28] sm:$0xff]  ;;  %v17_v19 = vld [vmem:[%s199_s0 + $0x30] sm:$0xff] }
   0x5   :  { %v59_v14 = vadd.f32 %v44_v9, %v43_v8  ;;  %v32_v16 = vld [vmem:[%s200_s1 + $0x28] sm:$0xff]  ;;  %v47_v17 = vmul.f32 %v31_v11, %v15_v10  ;;  %v33_v20 = vld [vmem:[%s200_s1 + $0x30] sm:$0xff]  ;;  %v18_v23 = vld [vmem:[%s199_s0 + $0x38] sm:$0xff] }
   0x6   :  { %v48_v21 = vmul.f32 %v32_v16, %v16_v15  ;;  %v34_v24 = vld [vmem:[%s200_s1 + $0x38] sm:$0xff]  ;;  %v49_v25 = vmul.f32 %v33_v20, %v17_v19  ;;  %v19_v27 = vld [vmem:[%s199_s0 + $0x40] sm:$0xff]  ;;  %v20_v31 = vld [vmem:[%s199_s0 + $0x48] sm:$0xff] }
   0x7   :  { %v60_v18 = vadd.f32 %v59_v14, %v45_v12  ;;  %v35_v28 = vld [vmem:[%s200_s1 + $0x40] sm:$0xff]  ;;  %v50_v29 = vmul.f32 %v34_v24, %v18_v23  ;;  %v36_v32 = vld [vmem:[%s200_s1 + $0x48] sm:$0xff]  ;;  %v21_v35 = vld [vmem:[%s199_s0 + $0x50] sm:$0xff] }
   0x8   :  { %v51_v33 = vmul.f32 %v35_v28, %v19_v27  ;;  %v37_v36 = vld [vmem:[%s200_s1 + $0x50] sm:$0xff]  ;;  %v52_v37 = vmul.f32 %v36_v32, %v20_v31  ;;  %v22_v39 = vld [vmem:[%s199_s0 + $0x58] sm:$0xff]  ;;  %v23_v43 = vld [vmem:[%s199_s0 + $0x60] sm:$0xff] }
   0x9   :  { %v61_v22 = vadd.f32 %v60_v18, %v46_v13  ;;  %v38_v40 = vld [vmem:[%s200_s1 + $0x58] sm:$0xff]  ;;  %v53_v41 = vmul.f32 %v37_v36, %v21_v35  ;;  %v39_v44 = vld [vmem:[%s200_s1 + $0x60] sm:$0xff]  ;;  %v24_v47 = vld [vmem:[%s199_s0 + $0x68] sm:$0xff] }
   0xa   :  { %v54_v45 = vmul.f32 %v38_v40, %v22_v39  ;;  %v40_v48 = vld [vmem:[%s200_s1 + $0x68] sm:$0xff]  ;;  %v55_v49 = vmul.f32 %v39_v44, %v23_v43  ;;  %v25_v51 = vld [vmem:[%s199_s0 + $0x70] sm:$0xff]  ;;  %v26_v55 = vld [vmem:[%s199_s0 + $0x78] sm:$0xff] }
   0xb   :  { %v62_v26 = vadd.f32 %v61_v22, %v47_v17  ;;  %v41_v52 = vld [vmem:[%s200_s1 + $0x70] sm:$0xff]  ;;  %v56_v53 = vmul.f32 %v40_v48, %v24_v47  ;;  %v42_v56 = vld [vmem:[%s200_s1 + $0x78] sm:$0xff] }
   0xc   :  { %v57_v57 = vmul.f32 %v41_v52, %v25_v51  ;;  %v58_v59 = vmul.f32 %v42_v56, %v26_v55 }
   0xd   :  { %v63_v30 = vadd.f32 %v62_v26, %v48_v21 }
   0xf   :  { %v64_v34 = vadd.f32 %v63_v30, %v49_v25 }
  0x11   :  { %v65_v38 = vadd.f32 %v64_v34, %v50_v29 }
  0x13   :  { %v66_v42 = vadd.f32 %v65_v38, %v51_v33 }
  0x15   :  { %v67_v46 = vadd.f32 %v66_v42, %v52_v37 }
  0x17   :  { %v68_v50 = vadd.f32 %v67_v46, %v53_v41 }
  0x19   :  { %v69_v54 = vadd.f32 %v68_v50, %v54_v45 }
  0x1b   :  { %v70_v58 = vadd.f32 %v69_v54, %v55_v49 }
  0x1d   :  { %v71_v60 = vadd.f32 %v70_v58, %v56_v53 }
  0x1f   :  { %v72_v61 = vadd.f32 %v71_v60, %v57_v57 }
  0x21   :  { %v73_v62 = vadd.f32 %v72_v61, %v58_v59 }
  0x23   :  { %v74_v63 = vrot.slane %v73_v62, 4 }
  0x25   :  { %v75_v0 = vadd.f32 %v74_v63, %v73_v62 }
  0x27   :  { %v76_v1 = vrot.slane %v75_v0, 2 }
  0x29   :  { %v77_v2 = vadd.f32 %v76_v1, %v75_v0 }
  0x2b   :  { %v78_v3 = vrot.slane %v77_v2, 1 }
  0x2d   :  { %v79_v4 = vadd.f32 %v78_v3, %v77_v2 }
  0x2f   :  { %80 = vst [vmem:[%s201_s2] sm:$0x1] %v79_v4 }

// kernel: net_forward.33
= control target key start
LH: loop header
LB: loop body
LE: loop exit
PB: predicated region body
PF: predicated region fallthrough
CT: control target
= control target key end

     0   :  { %s78_s0 = inlined_call_operand.vmem [shape: f32[8,128], index: 0, kind: input, shape index: {}]   ;;  %s79_s1 = inlined_call_operand.vmem [shape: f32[8,128], index: 1, kind: input, shape index: {}]   ;;  %s80_s2 = inlined_call_operand.vmem [shape: f32[8,128], index: 2, kind: output, shape index: {}]  }
   0x1   :  { %v11_v0 = vld [vmem:[%s78_s0] sm:$0xff] }
   0x2   :  { %v12_v1 = vld [vmem:[%s79_s1] sm:$0xff] }
   0x3   :  { %v13_v2 = vadd.f32 %v12_v1, %v11_v0 }
   0x5   :  { %v14_v3 = vmul.f32 %v13_v2, %v13_v2 }
   0x7   :  { %15 = vadd.xlane.f32.xlu0 %v14_v3 }
  0x7a   :  { %v16_v4 = vpop.xlane.xlu0 %15 }
  0x7b   :  { %50 = vrsqrt.f32 %v16_v4  ;;  %vm24_vm0 = vcmp.eq.f32.partialorder %v16_v4, inf  ;;  %v27_v12 = vand.u32 2147483648, %v16_v4  ;;  %vm26_vm1 = vcmp.eq.f32.partialorder %v16_v4, 0.0 }
  0x81   :  { %v51_v5 = vpop.eup %50 }
  0x82   :  { %v18_v6 = vmul.f32 %v51_v5, %v16_v4 }
  0x84   :  { %v19_v7 = vmul.f32 %v51_v5, %v18_v6 }
  0x86   :  { %v20_v8 = vmul.f32 0.5, %v19_v7 }
  0x88   :  { %v21_v9 = vsub.f32 1.5, %v20_v8 }
  0x8a   :  { %v22_v10 = vmul.f32 %v51_v5, %v21_v9 }
  0x8c   :  { %v23_v11 = vmul.f32 %v22_v10, %v16_v4 }
  0x8e   :  { %v25_v13 = vsel %vm24_vm0, %v16_v4, %v23_v11 }
  0x8f   :  { %v28_v14 = vsel %vm26_vm1, %v27_v12, %v25_v13 }
  0x90   :  { %v29_v15 = vmax.f32 %v28_v14, 1e-12 }
  0x92   :  { %52 = vrcp.f32 %v29_v15  ;;  %v41_v19 = vand.u32 2147483648, %v29_v15  ;;  %v39_v21 = vand.u32 2147483647, %v29_v15  ;;  %vm35_vm3 = vweird.f32 %v29_v15 }
  0x94   :  { %v42_v23 = vor.u32 1.1754944e-38, %v41_v19  ;;  %vm40_vm5 = vcmp.eq.f32.partialorder %v39_v21, 8.507059e+37 }
  0x98   :  { %v53_v16 = vpop.eup %52 }
  0x99   :  { %v31_v17 = vmul.f32 %v53_v16, %v29_v15  ;;  %vm36_vm2 = vweird.f32 %v53_v16 }
  0x9a   :  { %vm37_vm4 = vmor %vm35_vm3, %vm36_vm2 }
  0x9b   :  { %v32_v18 = vsub.f32 1.0, %v31_v17 }
  0x9d   :  { %v33_v20 = vmul.f32 %v53_v16, %v32_v18 }
  0x9f   :  { %v34_v22 = vadd.f32 %v53_v16, %v33_v20 }
  0xa1   :  { %v38_v24 = vsel %vm37_vm4, %v53_v16, %v34_v22 }
  0xa2   :  { %v43_v25 = vsel %vm40_vm5, %v42_v23, %v38_v24 }
  0xa3   :  { %v44_v26 = vmul.f32 %v43_v25, %v13_v2 }
  0xa5   :  { %45 = vst [vmem:[%s80_s2] sm:$0xff] %v44_v26 }

// kernel: net_forward.32
= control target key start
LH: loop header
LB: loop body
LE: loop exit
PB: predicated region body
PF: predicated region fallthrough
CT: control target
= control target key end

     0   :  { %s564_s18 = smov [#allocation4]   ;;  %s640_s0 = inlined_call_operand.vmem [shape: s32[2], index: 0, kind: input, shape index: {}]   ;;  %s641_s1 = inlined_call_operand.vmem [shape: s32[1,128], index: 1, kind: input, shape index: {}]   ;;  %s642_s2 = inlined_call_operand.vmem [shape: f32[1,128], index: 2, kind: input, shape index: {}]   ;;  %s643_s3 = inlined_call_operand.vmem [shape: bf16[128,128], index: 3, kind: input, shape index: {}]   ;;  %s644_s4 = inlined_call_operand.vmem [shape: f32[16,128], index: 4, kind: output, shape index: {}]  }
   0x1   :  { %s10_s17 = sshll.u32 %s640_s0, 4  ;;  %s11_s17 = int_to_ptr.vmem [resolvable:$true] %s10_s17 }
   0x2   :  { %13 = dma.vmem_to_smem %s11_s17, 16, %s564_s18, [#allocation3] }
   0x3   :  { %550 = dma.done.wait [#allocation3], 16 }
   0x4   :  { %551 = vsyncadd [#allocation3], 4294967280 }
   0x5   :  { %16 = sfence }
   0x6   :  { %s593_s19 = smov 0   ;;  %s595_s20 = smov 0  }
   0x7   :  { %s597_s21 = smov 0  }
   0x8 LB: > { %s34_s0 = sadd.s32 1, %s558_s20  ;;  %p449_p0 = scmp.ge.s32.totalorder %s562_s21, 1  ;;  %s562_s21 = sphi %s597_s21, %s22_s21   ;;  %s558_s20 = sphi %s595_s20, %s646_s20   ;;  %s554_s19 = sphi %s593_s19, %s645_s19  }
   0x9   : > { %p36_p1 = scmp.ge.s32.totalorder %s34_s0, 2  ;;  %p199_p2 = scmp.lt.s32.totalorder %s562_s21, 3 }
   0xb   : > { %s648_s0 = smov (%p36_p1, %s34_s0), 0  ;;  %p200_p3 = pnand %p449_p0, %p199_p2 }
   0xc   : > { %s248_s22 = sld [smem:[#allocation4 + %s554_s19]] (!%p200_p3)  ;;  %s453_s10 = sshll.u32 (!%p200_p3), %s554_s19, 3 }
   0xd   : > { %203 = sbr.rel (%p200_p3) target bundleno = 190 (0xbe), region = 32  ;;  %s234_s23 = sld [smem:[#allocation4 + %s554_s19]] (!%p200_p3) }
   0xe   : > { %s241_s24 = sld [smem:[#allocation4 + %s554_s19]] (!%p200_p3)  ;;  %p258_p7 = scmp.lt.s32.totalorder (!%p200_p3), %s554_s19, 1 }
  0x12   : > { %s450_s25 = sshll.u32 %s248_s22, 4  ;;  %v268_v5 = vlaneseq  ;;  %v270_v8 = vstv %s453_s10  ;;  %s656_s19 = smov (!%p258_p7, %s554_s19), 1 }
  0x13   : > { %p251_p4 = scmp.lt.s32.totalorder %s450_s25, 15  ;;  %p236_p5 = scmp.lt.s32.totalorder %s234_s23, 0 }
  0x14   : > { %p243_p6 = scmp.lt.s32.totalorder %s241_s24, 0  ;;  %v269_v7 = vshrl.u32 %v268_v5, 7  ;;  %s452_s11 = sshll.u32 %s656_s19, 3 }
  0x15   : > { %s650_s25 = smov (!%p251_p4, %s450_s25), 15  ;;  %s652_s23 = smov (!%p236_p5, %s234_s23), 0 }
  0x16   : > { %s451_s26 = sshll.u32 %s650_s25, 2  ;;  %s654_s24 = smov (!%p243_p6, %s241_s24), 0  ;;  %v271_v10 = vadd.s32 %v270_v8, %v269_v7 }
  0x17   : > { %s254_s29 = scalar_lea.vmem %s643_s3, %s451_s26  ;;  %s238_s6 = scalar_lea.vmem %s641_s1, %s652_s23 }
  0x18   : > { %v498_v0 = vld [vmem:[%s254_s29 + $0x38] sm:$0xff]  ;;  %v497_v1 = vld [vmem:[%s254_s29 + $0x30] sm:$0xff]  ;;  %s245_s9 = scalar_lea.vmem %s642_s2, %s654_s24  ;;  %v496_v2 = vld [vmem:[%s254_s29 + $0x28] sm:$0xff]  ;;  %s261_s14 = scalar_lea.vmem %s644_s4, %s452_s11 }
  0x19   : > { %346 = vmatpush.bf16.msra.mxu0 %v498_v0  ;;  %v495_v3 = vld [vmem:[%s254_s29 + $0x20] sm:$0xff]  ;;  %v494_v4 = vld [vmem:[%s254_s29 + $0x18] sm:$0xff]  ;;  %v493_v6 = vld [vmem:[%s254_s29 + $0x10] sm:$0xff] }
  0x1a   : > { %v492_v9 = vld [vmem:[%s254_s29 + $0x8] sm:$0xff]  ;;  %v524_v11 = vld [vmem:[%s238_s6] ss:$0 sm:$0xff] }
  0x1b   : > { %v525_v12 = vld [vmem:[%s245_s9] ss:$0 sm:$0xff]  ;;  %vm274_vm0 = vcmp.eq.s32.totalorder %v271_v10, %v524_v11 }
  0x1c   : > { %v491_v13 = vld [vmem:[%s254_s29] sm:$0xff]  ;;  %v487_v14 = vpack.c.bf16 %v525_v12, %v525_v12  ;;  %vm486_vm1 = vmpackc.low %vm274_vm0, %vm274_vm0 }
  0x1d   : > { %347 = vmatpush.bf16.msra.mxu0 %v497_v1 }
  0x21   : > { %348 = vmatpush.bf16.msra.mxu0 %v496_v2 }
  0x25   : > { %349 = vmatpush.bf16.msra.mxu0 %v495_v3 }
  0x29   : > { %350 = vmatpush.bf16.msra.mxu0 %v494_v4 }
  0x2d   : > { %351 = vmatpush.bf16.msra.mxu0 %v493_v6 }
  0x31   : > { %352 = vmatpush.bf16.msra.mxu0 %v492_v9 }
  0x35   : > { %353 = vmatpush.bf16.msra.mxu0 %v491_v13 }
  0x38   : > { %488 = vmatmul.msk.bf16.vlgmr.msra.gmra.mxu0 %vm486_vm1, %v487_v14 }
  0xb5   : > { %v355_v15 = vpop.f32.mrf.mxu0 }
  0xb6   : > { %365 = vst [vmem:[%s261_s14] sm:$0xff] %v355_v15 }
  0xbd   : > { %v357_v16 = vpop.f32.mrf.mxu0 }
  0xbe PF: > { %s22_s21 = sadd.s32 1, %s562_s21   ;;  %s645_s19 = smov %s558_s20 }
  0xbf   : > { %p19_p8 = scmp.ge.s32.totalorder %s22_s21, 4   ;;  %s646_s20 = smov %s648_s0 }
  0xc1   :  { %21 = sbr.rel (!%p19_p8) target bundleno = 8 (0x8), region = 76 }

// kernel: net_forward.50
= control target key start
LH: loop header
LB: loop body
LE: loop exit
PB: predicated region body
PF: predicated region fallthrough
CT: control target
= control target key end

     0   :  { %s237_s6 = smov 0   ;;  %s261_s0 = inlined_call_operand.vmem [shape: f32[16,128], index: 0, kind: input, shape index: {}]   ;;  %s262_s1 = inlined_call_operand.vmem [shape: f32[16,128], index: 1, kind: output, shape index: {}]  }
   0x1 LB: > { %s198_s7 = sadd.s32 4294967295, %s225_s6   ;;  %p202_p0 = scmp.ge.s32.totalorder %s225_s6, 1  ;;  %s225_s6 = sphi %s237_s6, %s11_s6  }
   0x2   : > { %p86_p1 = scmp.lt.s32.totalorder %s225_s6, 3 }
   0x4   : > { %p87_p2 = pnand %p202_p0, %p86_p1 }
   0x5   : > { %p104_p3 = scmp.lt.s32.totalorder (!%p87_p2), %s198_s7, 1 }
   0x6   : > { %90 = sbr.rel (%p87_p2) target bundleno = 176 (0xb0), region = 24 }
   0xb   : > { %s264_s7 = smov (!%p104_p3, %s198_s7), 1 }
   0xc   : > { %s203_s8 = sshll.u32 %s264_s7, 3 }
   0xd   : > { %s107_s11 = scalar_lea.vmem %s261_s0, %s203_s8  ;;  %s111_s14 = scalar_lea.vmem %s262_s1, %s203_s8 }
   0xe   : > { %v112_v0 = vld [vmem:[%s107_s11] sm:$0xff] }
   0xf   : > { %v113_v1 = vmul.f32 %v112_v0, %v112_v0 }
  0x11   : > { %114 = vadd.xlane.f32.xlu0 %v113_v1 }
  0x84   : > { %v115_v2 = vpop.xlane.xlu0 %114 }
  0x85   : > { %215 = vrsqrt.f32 %v115_v2  ;;  %vm123_vm0 = vcmp.eq.f32.partialorder %v115_v2, inf  ;;  %v126_v10 = vand.u32 2147483648, %v115_v2  ;;  %vm125_vm1 = vcmp.eq.f32.partialorder %v115_v2, 0.0 }
  0x8b   : > { %v216_v3 = vpop.eup %215 }
  0x8c   : > { %v117_v4 = vmul.f32 %v216_v3, %v115_v2 }
  0x8e   : > { %v118_v5 = vmul.f32 %v216_v3, %v117_v4 }
  0x90   : > { %v119_v6 = vmul.f32 0.5, %v118_v5 }
  0x92   : > { %v120_v7 = vsub.f32 1.5, %v119_v6 }
  0x94   : > { %v121_v8 = vmul.f32 %v216_v3, %v120_v7 }
  0x96   : > { %v122_v9 = vmul.f32 %v121_v8, %v115_v2 }
  0x98   : > { %v124_v11 = vsel %vm123_vm0, %v115_v2, %v122_v9 }
  0x99   : > { %v127_v12 = vsel %vm125_vm1, %v126_v10, %v124_v11 }
  0x9a   : > { %v128_v13 = vmax.f32 %v127_v12, 1e-12 }
  0x9c   : > { %217 = vrcp.f32 %v128_v13  ;;  %v140_v17 = vand.u32 2147483648, %v128_v13  ;;  %v138_v19 = vand.u32 2147483647, %v128_v13  ;;  %vm134_vm3 = vweird.f32 %v128_v13 }
  0x9e   : > { %v141_v21 = vor.u32 1.1754944e-38, %v140_v17  ;;  %vm139_vm5 = vcmp.eq.f32.partialorder %v138_v19, 8.507059e+37 }
  0xa2   : > { %v218_v14 = vpop.eup %217 }
  0xa3   : > { %v130_v15 = vmul.f32 %v218_v14, %v128_v13  ;;  %vm135_vm2 = vweird.f32 %v218_v14 }
  0xa4   : > { %vm136_vm4 = vmor %vm134_vm3, %vm135_vm2 }
  0xa5   : > { %v131_v16 = vsub.f32 1.0, %v130_v15 }
  0xa7   : > { %v132_v18 = vmul.f32 %v218_v14, %v131_v16 }
  0xa9   : > { %v133_v20 = vadd.f32 %v218_v14, %v132_v18 }
  0xab   : > { %v137_v22 = vsel %vm136_vm4, %v218_v14, %v133_v20 }
  0xac   : > { %v142_v23 = vsel %vm139_vm5, %v141_v21, %v137_v22 }
  0xad   : > { %v143_v24 = vmul.f32 %v142_v23, %v112_v0 }
  0xaf   : > { %144 = vst [vmem:[%s111_s14] sm:$0xff] %v143_v24 }
  0xb0 PF: > { %s11_s6 = sadd.s32 1, %s225_s6  }
  0xb1   : > { %p8_p4 = scmp.ge.s32.totalorder %s11_s6, 4  }
  0xb3   :  { %10 = sbr.rel (!%p8_p4) target bundleno = 1 (0x1), region = 54 }

// kernel: net_forward.52
= control target key start
LH: loop header
LB: loop body
LE: loop exit
PB: predicated region body
PF: predicated region fallthrough
CT: control target
= control target key end

     0   :  { %s486_s9 = smov 0   ;;  %s488_s10 = smov 0   ;;  %s623_s0 = inlined_call_operand.vmem [shape: f32[16,256], index: 0, kind: input, shape index: {}]   ;;  %s624_s1 = inlined_call_operand.vmem [shape: f32[256,128], index: 1, kind: input, shape index: {}]   ;;  %s625_s2 = inlined_call_operand.vmem [shape: f32[16,128], index: 2, kind: output, shape index: {}]  }
   0x1   :  { %s490_s11 = smov 0  }
   0x2 LB: > { %s31_s12 = sadd.s32 1, %s465_s10  ;;  %p416_p0 = scmp.ge.s32.totalorder %s469_s11, 1  ;;  %s469_s11 = sphi %s490_s11, %s12_s11   ;;  %s465_s10 = sphi %s488_s10, %s627_s10   ;;  %s461_s9 = sphi %s486_s9, %s626_s9  }
   0x3   : > { %p33_p1 = scmp.ge.s32.totalorder %s31_s12, 2  ;;  %p156_p2 = scmp.lt.s32.totalorder %s469_s11, 3 }
   0x5   : > { %s629_s12 = smov (%p33_p1, %s31_s12), 0  ;;  %p157_p3 = pnand %p416_p0, %p156_p2 }
   0x6   : > { %p193_p4 = scmp.lt.s32.totalorder (!%p157_p3), %s461_s9, 1 }
   0x7   : > { %160 = sbr.rel (%p157_p3) target bundleno = 181 (0xb5), region = 28 }
   0xc   : > { %v242_v0 = vld [vmem:[%s624_s1 + $0x70] sm:$0xff]  ;;  %v243_v1 = vld [vmem:[%s624_s1 + $0x78] sm:$0xff]  ;;  %v240_v5 = vld [vmem:[%s624_s1 + $0x60] sm:$0xff]  ;;  %s631_s9 = smov (!%p193_p4, %s461_s9), 1 }
   0xd   : > { %v258_v2 = vld [vmem:[%s624_s1 + $0xf0] sm:$0xff]  ;;  %v267_v3 = vpack.c.bf16 %v243_v1, %v242_v0  ;;  %v259_v4 = vld [vmem:[%s624_s1 + $0xf8] sm:$0xff]  ;;  %v241_v6 = vld [vmem:[%s624_s1 + $0x68] sm:$0xff]  ;;  %s422_s21 = sshll.u32 %s631_s9, 4  ;;  %s419_s5 = sshll.u32 %s631_s9, 3 }
   0xe   : > { %v275_v7 = vpack.c.bf16 %v259_v4, %v258_v2  ;;  %v256_v8 = vld [vmem:[%s624_s1 + $0xe0] sm:$0xff]  ;;  %v257_v9 = vld [vmem:[%s624_s1 + $0xe8] sm:$0xff]  ;;  %v266_v10 = vpack.c.bf16 %v241_v6, %v240_v5  ;;  %v238_v12 = vld [vmem:[%s624_s1 + $0x50] sm:$0xff]  ;;  %s200_s28 = scalar_lea.vmem %s623_s0, %s422_s21  ;;  %s217_s8 = scalar_lea.vmem %s625_s2, %s419_s5 }
   0xf   : > { %276 = vmatpush.bf16.msra.mxu0 %v267_v3  ;;  %v274_v11 = vpack.c.bf16 %v257_v9, %v256_v8  ;;  %v239_v13 = vld [vmem:[%s624_s1 + $0x58] sm:$0xff]  ;;  %v254_v14 = vld [vmem:[%s624_s1 + $0xd0] sm:$0xff]  ;;  %v236_v18 = vld [vmem:[%s624_s1 + $0x40] sm:$0xff] }
  0x10   : > { %289 = vmatpush.bf16.msra.mxu1 %v275_v7  ;;  %v255_v15 = vld [vmem:[%s624_s1 + $0xd8] sm:$0xff]  ;;  %v265_v16 = vpack.c.bf16 %v239_v13, %v238_v12  ;;  %v237_v19 = vld [vmem:[%s624_s1 + $0x48] sm:$0xff]  ;;  %v252_v20 = vld [vmem:[%s624_s1 + $0xc0] sm:$0xff] }
  0x11   : > { %v273_v17 = vpack.c.bf16 %v255_v15, %v254_v14  ;;  %v253_v21 = vld [vmem:[%s624_s1 + $0xc8] sm:$0xff]  ;;  %v264_v22 = vpack.c.bf16 %v237_v19, %v236_v18  ;;  %v234_v24 = vld [vmem:[%s624_s1 + $0x30] sm:$0xff]  ;;  %v235_v25 = vld [vmem:[%s624_s1 + $0x38] sm:$0xff] }
  0x12   : > { %v272_v23 = vpack.c.bf16 %v253_v21, %v252_v20  ;;  %v250_v26 = vld [vmem:[%s624_s1 + $0xb0] sm:$0xff]  ;;  %v251_v27 = vld [vmem:[%s624_s1 + $0xb8] sm:$0xff]  ;;  %v263_v28 = vpack.c.bf16 %v235_v25, %v234_v24  ;;  %v232_v30 = vld [vmem:[%s624_s1 + $0x20] sm:$0xff] }
  0x13   : > { %277 = vmatpush.bf16.msra.mxu0 %v266_v10  ;;  %v271_v29 = vpack.c.bf16 %v251_v27, %v250_v26  ;;  %v233_v31 = vld [vmem:[%s624_s1 + $0x28] sm:$0xff]  ;;  %v248_v32 = vld [vmem:[%s624_s1 + $0xa0] sm:$0xff]  ;;  %v230_v36 = vld [vmem:[%s624_s1 + $0x10] sm:$0xff] }
  0x14   : > { %290 = vmatpush.bf16.msra.mxu1 %v274_v11  ;;  %v249_v33 = vld [vmem:[%s624_s1 + $0xa8] sm:$0xff]  ;;  %v262_v34 = vpack.c.bf16 %v233_v31, %v232_v30  ;;  %v231_v37 = vld [vmem:[%s624_s1 + $0x18] sm:$0xff]  ;;  %v246_v38 = vld [vmem:[%s624_s1 + $0x90] sm:$0xff] }
  0x15   : > { %v270_v35 = vpack.c.bf16 %v249_v33, %v248_v32  ;;  %v247_v39 = vld [vmem:[%s624_s1 + $0x98] sm:$0xff]  ;;  %v261_v40 = vpack.c.bf16 %v231_v37, %v230_v36  ;;  %v228_v42 = vld [vmem:[%s624_s1] sm:$0xff]  ;;  %v229_v43 = vld [vmem:[%s624_s1 + $0x8] sm:$0xff] }
  0x16   : > { %v269_v41 = vpack.c.bf16 %v247_v39, %v246_v38  ;;  %v244_v44 = vld [vmem:[%s624_s1 + $0x80] sm:$0xff]  ;;  %v245_v45 = vld [vmem:[%s624_s1 + $0x88] sm:$0xff]  ;;  %v260_v46 = vpack.c.bf16 %v229_v43, %v228_v42 }
  0x17   : > { %278 = vmatpush.bf16.msra.mxu0 %v265_v16  ;;  %v224_v47 = vld [vmem:[%s200_s28] sm:$0xff]  ;;  %v268_v48 = vpack.c.bf16 %v245_v45, %v244_v44  ;;  %v225_v49 = vld [vmem:[%s200_s28 + $0x8] sm:$0xff] }
  0x18   : > { %291 = vmatpush.bf16.msra.mxu1 %v273_v17  ;;  %v226_v50 = vpack.c.bf16 %v224_v47, %v224_v47  ;;  %v227_v51 = vpack.c.bf16 %v225_v49, %v225_v49 }
  0x1b   : > { %279 = vmatpush.bf16.msra.mxu0 %v264_v22 }
  0x1c   : > { %292 = vmatpush.bf16.msra.mxu1 %v272_v23 }
  0x1f   : > { %280 = vmatpush.bf16.msra.mxu0 %v263_v28 }
  0x20   : > { %293 = vmatpush.bf16.msra.mxu1 %v271_v29 }
  0x23   : > { %281 = vmatpush.bf16.msra.mxu0 %v262_v34 }
  0x24   : > { %294 = vmatpush.bf16.msra.mxu1 %v270_v35 }
  0x27   : > { %282 = vmatpush.bf16.msra.mxu0 %v261_v40 }
  0x28   : > { %295 = vmatpush.bf16.msra.mxu1 %v269_v41 }
  0x2b   : > { %283 = vmatpush.bf16.msra.mxu0 %v260_v46 }
  0x2c   : > { %296 = vmatpush.bf16.msra.mxu1 %v268_v48 }
  0x2e   : > { %284 = vmatmul.bf16.vlgmr.msra.gmra.mxu0 %v226_v50 }
  0x2f   : > { %297 = vmatmul.bf16.vlgmr.msra.gmra.mxu1 %v227_v51 }
  0xab   : > { %v285_v52 = vpop.f32.mrf.mxu0 }
  0xac   : > { %v298_v53 = vpop.f32.mrf.mxu1 }
  0xad   : > { %v299_v54 = vadd.f32 %v298_v53, %v285_v52 }
  0xaf   : > { %vm308_vm0 = vcmp.gt.f32.partialorder %v299_v54, 0.0  ;;  %v309_v55 = vmul.f32 0.01, %v299_v54 }
  0xb1   : > { %v310_v56 = vsel %vm308_vm0, %v299_v54, %v309_v55 }
  0xb2   : > { %311 = vst [vmem:[%s217_s8] sm:$0xff] %v310_v56 }
  0xb3   : > { %v287_v57 = vpop.f32.mrf.mxu0 }
  0xb4   : > { %v300_v58 = vpop.f32.mrf.mxu1 }
  0xb5 PF: > { %s12_s11 = sadd.s32 1, %s469_s11   ;;  %s626_s9 = smov %s465_s10 }
  0xb6   : > { %p9_p5 = scmp.ge.s32.totalorder %s12_s11, 4   ;;  %s627_s10 = smov %s629_s12 }
  0xb8   :  { %11 = sbr.rel (!%p9_p5) target bundleno = 2 (0x2), region = 69 }

// kernel: net_forward.49
= control target key start
LH: loop header
LB: loop body
LE: loop exit
PB: predicated region body
PF: predicated region fallthrough
CT: control target
= control target key end

     0   :  { %s626_s21 = smov [#allocation4]   ;;  %s710_s0 = inlined_call_operand.vmem [shape: s32[2], index: 0, kind: input, shape index: {}]   ;;  %s711_s1 = inlined_call_operand.vmem [shape: s32[1,128], index: 1, kind: input, shape index: {}]   ;;  %s712_s2 = inlined_call_operand.vmem [shape: f32[1,128], index: 2, kind: input, shape index: {}]   ;;  %s713_s3 = inlined_call_operand.vmem [shape: bf16[128,128], index: 3, kind: input, shape index: {}]   ;;  %s714_s4 = inlined_call_operand.vmem [shape: f32[16,128], index: 4, kind: input, shape index: {}]   ;;  %s715_s5 = inlined_call_operand.vmem [shape: f32[16,128], index: 5, kind: output, shape index: {}]  }
   0x1   :  { %s11_s20 = sshll.u32 %s710_s0, 4  ;;  %s12_s20 = int_to_ptr.vmem [resolvable:$true] %s11_s20 }
   0x2   :  { %14 = dma.vmem_to_smem %s12_s20, 16, %s626_s21, [#allocation3] }
   0x3   :  { %612 = dma.done.wait [#allocation3], 16 }
   0x4   :  { %613 = vsyncadd [#allocation3], 4294967280 }
   0x5   :  { %17 = sfence }
   0x6   :  { %s660_s22 = smov 0   ;;  %s662_s23 = smov 0  }
   0x7   :  { %s664_s24 = smov 0  }
   0x8 LB: > { %s35_s0 = sadd.s32 1, %s620_s23  ;;  %p510_p0 = scmp.ge.s32.totalorder %s624_s24, 1  ;;  %s624_s24 = sphi %s664_s24, %s23_s24   ;;  %s620_s23 = sphi %s662_s23, %s717_s23   ;;  %s616_s22 = sphi %s660_s22, %s716_s22  }
   0x9   : > { %p37_p1 = scmp.ge.s32.totalorder %s35_s0, 2  ;;  %p233_p2 = scmp.lt.s32.totalorder %s624_s24, 3 }
   0xb   : > { %s719_s0 = smov (%p37_p1, %s35_s0), 0  ;;  %p234_p3 = pnand %p510_p0, %p233_p2 }
   0xc   : > { %s288_s25 = sld [smem:[#allocation4 + %s616_s22]] (!%p234_p3)  ;;  %s515_s14 = sshll.u32 (!%p234_p3), %s616_s22, 3 }
   0xd   : > { %237 = sbr.rel (%p234_p3) target bundleno = 190 (0xbe), region = 36  ;;  %s274_s26 = sld [smem:[#allocation4 + %s616_s22]] (!%p234_p3) }
   0xe   : > { %s281_s27 = sld [smem:[#allocation4 + %s616_s22]] (!%p234_p3)  ;;  %p298_p7 = scmp.lt.s32.totalorder (!%p234_p3), %s616_s22, 1 }
  0x12   : > { %s511_s28 = sshll.u32 %s288_s25, 4  ;;  %v312_v5 = vlaneseq  ;;  %v314_v8 = vstv %s515_s14  ;;  %s727_s22 = smov (!%p298_p7, %s616_s22), 1 }
  0x13   : > { %p291_p4 = scmp.lt.s32.totalorder %s511_s28, 15  ;;  %p276_p5 = scmp.lt.s32.totalorder %s274_s26, 0 }
  0x14   : > { %p283_p6 = scmp.lt.s32.totalorder %s281_s27, 0  ;;  %v313_v7 = vshrl.u32 %v312_v5, 7  ;;  %s513_s15 = sshll.u32 %s727_s22, 3 }
  0x15   : > { %s721_s28 = smov (!%p291_p4, %s511_s28), 15  ;;  %s723_s26 = smov (!%p276_p5, %s274_s26), 0 }
  0x16   : > { %s512_s29 = sshll.u32 %s721_s28, 2  ;;  %s725_s27 = smov (!%p283_p6, %s281_s27), 0  ;;  %v315_v10 = vadd.s32 %v314_v8, %v313_v7 }
  0x17   : > { %s294_s7 = scalar_lea.vmem %s713_s3, %s512_s29  ;;  %s278_s10 = scalar_lea.vmem %s711_s1, %s723_s26 }
  0x18   : > { %v560_v0 = vld [vmem:[%s294_s7 + $0x38] sm:$0xff]  ;;  %v559_v1 = vld [vmem:[%s294_s7 + $0x30] sm:$0xff]  ;;  %s285_s13 = scalar_lea.vmem %s712_s2, %s725_s27  ;;  %v558_v2 = vld [vmem:[%s294_s7 + $0x28] sm:$0xff]  ;;  %s301_s18 = scalar_lea.vmem %s714_s4, %s513_s15 }
  0x19   : > { %390 = vmatpush.bf16.msra.mxu0 %v560_v0  ;;  %v557_v3 = vld [vmem:[%s294_s7 + $0x20] sm:$0xff]  ;;  %v556_v4 = vld [vmem:[%s294_s7 + $0x18] sm:$0xff]  ;;  %v555_v6 = vld [vmem:[%s294_s7 + $0x10] sm:$0xff]  ;;  %s305_s21 = scalar_lea.vmem %s715_s5, %s513_s15 }
  0x1a   : > { %v554_v9 = vld [vmem:[%s294_s7 + $0x8] sm:$0xff]  ;;  %v586_v11 = vld [vmem:[%s278_s10] ss:$0 sm:$0xff] }
  0x1b   : > { %v587_v12 = vld [vmem:[%s285_s13] ss:$0 sm:$0xff]  ;;  %vm318_vm0 = vcmp.eq.s32.totalorder %v315_v10, %v586_v11 }
  0x1c   : > { %v553_v13 = vld [vmem:[%s294_s7] sm:$0xff]  ;;  %v549_v14 = vpack.c.bf16 %v587_v12, %v587_v12  ;;  %vm548_vm1 = vmpackc.low %vm318_vm0, %vm318_vm0 }
  0x1d   : > { %391 = vmatpush.bf16.msra.mxu0 %v559_v1  ;;  %v412_v17 = vld [vmem:[%s301_s18] sm:$0xff] }
  0x21   : > { %392 = vmatpush.bf16.msra.mxu0 %v558_v2 }
  0x25   : > { %393 = vmatpush.bf16.msra.mxu0 %v557_v3 }
  0x29   : > { %394 = vmatpush.bf16.msra.mxu0 %v556_v4 }
  0x2d   : > { %395 = vmatpush.bf16.msra.mxu0 %v555_v6 }
  0x31   : > { %396 = vmatpush.bf16.msra.mxu0 %v554_v9 }
  0x35   : > { %397 = vmatpush.bf16.msra.mxu0 %v553_v13 }
  0x38   : > { %550 = vmatmul.msk.bf16.vlgmr.msra.gmra.mxu0 %vm548_vm1, %v549_v14 }
  0xb5   : > { %v399_v15 = vpop.f32.mrf.mxu0 }
  0xb6   : > { %vm409_vm2 = vcmp.gt.f32.partialorder %v399_v15, 0.0  ;;  %v410_v16 = vmul.f32 0.01, %v399_v15 }
  0xb8   : > { %v411_v18 = vsel %vm409_vm2, %v399_v15, %v410_v16 }
  0xb9   : > { %v413_v19 = vadd.f32 %v412_v17, %v411_v18 }
  0xbb   : > { %414 = vst [vmem:[%s305_s21] sm:$0xff] %v413_v19 }
  0xbd   : > { %v401_v20 = vpop.f32.mrf.mxu0 }
  0xbe PF: > { %s23_s24 = sadd.s32 1, %s624_s24   ;;  %s716_s22 = smov %s620_s23 }
  0xbf   : > { %p20_p8 = scmp.ge.s32.totalorder %s23_s24, 4   ;;  %s717_s23 = smov %s719_s0 }
  0xc1   :  { %22 = sbr.rel (!%p20_p8) target bundleno = 8 (0x8), region = 83 }

// kernel: net_forward.54
= control target key start
LH: loop header
LB: loop body
LE: loop exit
PB: predicated region body
PF: predicated region fallthrough
CT: control target
= control target key end

     0   :  { %s564_s12 = smov 0   ;;  %s566_s13 = smov 0   ;;  %s704_s0 = inlined_call_operand.vmem [shape: f32[16,256], index: 0, kind: input, shape index: {}]   ;;  %s705_s1 = inlined_call_operand.vmem [shape: f32[256,128], index: 1, kind: input, shape index: {}]   ;;  %s706_s2 = inlined_call_operand.vmem [shape: f32[16,128], index: 2, kind: input, shape index: {}]   ;;  %s707_s3 = inlined_call_operand.vmem [shape: f32[16,128], index: 3, kind: output, shape index: {}]  }
   0x1   :  { %s568_s14 = smov 0  }
   0x2 LB: > { %s32_s15 = sadd.s32 1, %s538_s13  ;;  %p488_p0 = scmp.ge.s32.totalorder %s542_s14, 1  ;;  %s542_s14 = sphi %s568_s14, %s13_s14   ;;  %s538_s13 = sphi %s566_s13, %s709_s13   ;;  %s534_s12 = sphi %s564_s12, %s708_s12  }
   0x3   : > { %p34_p1 = scmp.ge.s32.totalorder %s32_s15, 2  ;;  %p195_p2 = scmp.lt.s32.totalorder %s542_s14, 3 }
   0x5   : > { %s711_s15 = smov (%p34_p1, %s32_s15), 0  ;;  %p196_p3 = pnand %p488_p0, %p195_p2 }
   0x6   : > { %p241_p4 = scmp.lt.s32.totalorder (!%p196_p3), %s534_s12, 1 }
   0x7   : > { %199 = sbr.rel (%p196_p3) target bundleno = 181 (0xb5), region = 32 }
   0xc   : > { %v297_v0 = vld [vmem:[%s705_s1 + $0x70] sm:$0xff]  ;;  %v298_v1 = vld [vmem:[%s705_s1 + $0x78] sm:$0xff]  ;;  %v295_v5 = vld [vmem:[%s705_s1 + $0x60] sm:$0xff]  ;;  %s713_s12 = smov (!%p241_p4, %s534_s12), 1 }
   0xd   : > { %v313_v2 = vld [vmem:[%s705_s1 + $0xf0] sm:$0xff]  ;;  %v322_v3 = vpack.c.bf16 %v298_v1, %v297_v0  ;;  %v314_v4 = vld [vmem:[%s705_s1 + $0xf8] sm:$0xff]  ;;  %v296_v6 = vld [vmem:[%s705_s1 + $0x68] sm:$0xff]  ;;  %s495_s26 = sshll.u32 %s713_s12, 4  ;;  %s491_s11 = sshll.u32 %s713_s12, 3 }
   0xe   : > { %v330_v7 = vpack.c.bf16 %v314_v4, %v313_v2  ;;  %v311_v8 = vld [vmem:[%s705_s1 + $0xe0] sm:$0xff]  ;;  %v312_v9 = vld [vmem:[%s705_s1 + $0xe8] sm:$0xff]  ;;  %v321_v10 = vpack.c.bf16 %v296_v6, %v295_v5  ;;  %v293_v12 = vld [vmem:[%s705_s1 + $0x50] sm:$0xff]  ;;  %s248_s6 = scalar_lea.vmem %s704_s0, %s495_s26  ;;  %s265_s18 = scalar_lea.vmem %s706_s2, %s491_s11 }
   0xf   : > { %331 = vmatpush.bf16.msra.mxu0 %v322_v3  ;;  %v329_v11 = vpack.c.bf16 %v312_v9, %v311_v8  ;;  %v294_v13 = vld [vmem:[%s705_s1 + $0x58] sm:$0xff]  ;;  %v309_v14 = vld [vmem:[%s705_s1 + $0xd0] sm:$0xff]  ;;  %v291_v18 = vld [vmem:[%s705_s1 + $0x40] sm:$0xff]  ;;  %s272_s21 = scalar_lea.vmem %s707_s3, %s491_s11 }
  0x10   : > { %344 = vmatpush.bf16.msra.mxu1 %v330_v7  ;;  %v310_v15 = vld [vmem:[%s705_s1 + $0xd8] sm:$0xff]  ;;  %v320_v16 = vpack.c.bf16 %v294_v13, %v293_v12  ;;  %v292_v19 = vld [vmem:[%s705_s1 + $0x48] sm:$0xff]  ;;  %v307_v20 = vld [vmem:[%s705_s1 + $0xc0] sm:$0xff] }
  0x11   : > { %v328_v17 = vpack.c.bf16 %v310_v15, %v309_v14  ;;  %v308_v21 = vld [vmem:[%s705_s1 + $0xc8] sm:$0xff]  ;;  %v319_v22 = vpack.c.bf16 %v292_v19, %v291_v18  ;;  %v289_v24 = vld [vmem:[%s705_s1 + $0x30] sm:$0xff]  ;;  %v290_v25 = vld [vmem:[%s705_s1 + $0x38] sm:$0xff] }
  0x12   : > { %v327_v23 = vpack.c.bf16 %v308_v21, %v307_v20  ;;  %v305_v26 = vld [vmem:[%s705_s1 + $0xb0] sm:$0xff]  ;;  %v306_v27 = vld [vmem:[%s705_s1 + $0xb8] sm:$0xff]  ;;  %v318_v28 = vpack.c.bf16 %v290_v25, %v289_v24  ;;  %v287_v30 = vld [vmem:[%s705_s1 + $0x20] sm:$0xff] }
  0x13   : > { %332 = vmatpush.bf16.msra.mxu0 %v321_v10  ;;  %v326_v29 = vpack.c.bf16 %v306_v27, %v305_v26  ;;  %v288_v31 = vld [vmem:[%s705_s1 + $0x28] sm:$0xff]  ;;  %v303_v32 = vld [vmem:[%s705_s1 + $0xa0] sm:$0xff]  ;;  %v285_v36 = vld [vmem:[%s705_s1 + $0x10] sm:$0xff] }
  0x14   : > { %345 = vmatpush.bf16.msra.mxu1 %v329_v11  ;;  %v304_v33 = vld [vmem:[%s705_s1 + $0xa8] sm:$0xff]  ;;  %v317_v34 = vpack.c.bf16 %v288_v31, %v287_v30  ;;  %v286_v37 = vld [vmem:[%s705_s1 + $0x18] sm:$0xff]  ;;  %v301_v38 = vld [vmem:[%s705_s1 + $0x90] sm:$0xff] }
  0x15   : > { %v325_v35 = vpack.c.bf16 %v304_v33, %v303_v32  ;;  %v302_v39 = vld [vmem:[%s705_s1 + $0x98] sm:$0xff]  ;;  %v316_v40 = vpack.c.bf16 %v286_v37, %v285_v36  ;;  %v283_v42 = vld [vmem:[%s705_s1] sm:$0xff]  ;;  %v284_v43 = vld [vmem:[%s705_s1 + $0x8] sm:$0xff] }
  0x16   : > { %v324_v41 = vpack.c.bf16 %v302_v39, %v301_v38  ;;  %v299_v44 = vld [vmem:[%s705_s1 + $0x80] sm:$0xff]  ;;  %v300_v45 = vld [vmem:[%s705_s1 + $0x88] sm:$0xff]  ;;  %v315_v46 = vpack.c.bf16 %v284_v43, %v283_v42 }
  0x17   : > { %333 = vmatpush.bf16.msra.mxu0 %v320_v16  ;;  %v279_v47 = vld [vmem:[%s248_s6] sm:$0xff]  ;;  %v323_v48 = vpack.c.bf16 %v300_v45, %v299_v44  ;;  %v280_v49 = vld [vmem:[%s248_s6 + $0x8] sm:$0xff] }
  0x18   : > { %346 = vmatpush.bf16.msra.mxu1 %v328_v17  ;;  %v281_v50 = vpack.c.bf16 %v279_v47, %v279_v47  ;;  %v282_v51 = vpack.c.bf16 %v280_v49, %v280_v49  ;;  %v366_v56 = vld [vmem:[%s265_s18] sm:$0xff] }
  0x1b   : > { %334 = vmatpush.bf16.msra.mxu0 %v319_v22 }
  0x1c   : > { %347 = vmatpush.bf16.msra.mxu1 %v327_v23 }
  0x1f   : > { %335 = vmatpush.bf16.msra.mxu0 %v318_v28 }
  0x20   : > { %348 = vmatpush.bf16.msra.mxu1 %v326_v29 }
  0x23   : > { %336 = vmatpush.bf16.msra.mxu0 %v317_v34 }
  0x24   : > { %349 = vmatpush.bf16.msra.mxu1 %v325_v35 }
  0x27   : > { %337 = vmatpush.bf16.msra.mxu0 %v316_v40 }
  0x28   : > { %350 = vmatpush.bf16.msra.mxu1 %v324_v41 }
  0x2b   : > { %338 = vmatpush.bf16.msra.mxu0 %v315_v46 }
  0x2c   : > { %351 = vmatpush.bf16.msra.mxu1 %v323_v48 }
  0x2e   : > { %339 = vmatmul.bf16.vlgmr.msra.gmra.mxu0 %v281_v50 }
  0x2f   : > { %352 = vmatmul.bf16.vlgmr.msra.gmra.mxu1 %v282_v51 }
  0xab   : > { %v340_v52 = vpop.f32.mrf.mxu0 }
  0xac   : > { %v353_v53 = vpop.f32.mrf.mxu1 }
  0xad   : > { %v354_v54 = vadd.f32 %v353_v53, %v340_v52 }
  0xaf   : > { %vm363_vm0 = vcmp.gt.f32.partialorder %v354_v54, 0.0  ;;  %v364_v55 = vmul.f32 0.01, %v354_v54 }
  0xb1   : > { %v365_v57 = vsel %vm363_vm0, %v354_v54, %v364_v55 }
  0xb2   : > { %v367_v58 = vadd.f32 %v366_v56, %v365_v57 }
  0xb3   : > { %v342_v59 = vpop.f32.mrf.mxu0 }
  0xb4   : > { %368 = vst [vmem:[%s272_s21] sm:$0xff] %v367_v58  ;;  %v355_v60 = vpop.f32.mrf.mxu1 }
  0xb5 PF: > { %s13_s14 = sadd.s32 1, %s542_s14   ;;  %s708_s12 = smov %s538_s13 }
  0xb6   : > { %p10_p5 = scmp.ge.s32.totalorder %s13_s14, 4   ;;  %s709_s13 = smov %s711_s15 }
  0xb8   :  { %12 = sbr.rel (!%p10_p5) target bundleno = 2 (0x2), region = 76 }

// kernel: net_forward.55
= control target key start
LH: loop header
LB: loop body
LE: loop exit
PB: predicated region body
PF: predicated region fallthrough
CT: control target
= control target key end

     0   :  { %s136_s1 = inlined_call_operand.vmem [shape: f32[128,128], index: 1, kind: input, shape index: {}]   ;;  %s137_s0 = inlined_call_operand.vmem [shape: f32[8,128], index: 0, kind: input, shape index: {}]   ;;  %s138_s2 = inlined_call_operand.vmem [shape: f32[8,128], index: 2, kind: output, shape index: {}]  }
   0x1   :  { %v33_v0 = vld [vmem:[%s136_s1 + $0x70] sm:$0xff]  ;;  %v34_v1 = vld [vmem:[%s136_s1 + $0x78] sm:$0xff]  ;;  %v31_v2 = vld [vmem:[%s136_s1 + $0x60] sm:$0xff] }
   0x2   :  { %v42_v3 = vpack.c.bf16 %v34_v1, %v33_v0  ;;  %v32_v4 = vld [vmem:[%s136_s1 + $0x68] sm:$0xff]  ;;  %v29_v6 = vld [vmem:[%s136_s1 + $0x50] sm:$0xff]  ;;  %v30_v7 = vld [vmem:[%s136_s1 + $0x58] sm:$0xff] }
   0x3   :  { %v41_v5 = vpack.c.bf16 %v32_v4, %v31_v2  ;;  %v40_v8 = vpack.c.bf16 %v30_v7, %v29_v6  ;;  %v27_v9 = vld [vmem:[%s136_s1 + $0x40] sm:$0xff]  ;;  %v28_v10 = vld [vmem:[%s136_s1 + $0x48] sm:$0xff]  ;;  %v25_v12 = vld [vmem:[%s136_s1 + $0x30] sm:$0xff] }
   0x4   :  { %43 = vmatpush.bf16.msra.mxu0 %v42_v3  ;;  %v39_v11 = vpack.c.bf16 %v28_v10, %v27_v9  ;;  %v26_v13 = vld [vmem:[%s136_s1 + $0x38] sm:$0xff]  ;;  %v23_v15 = vld [vmem:[%s136_s1 + $0x20] sm:$0xff]  ;;  %v24_v16 = vld [vmem:[%s136_s1 + $0x28] sm:$0xff] }
   0x5   :  { %v38_v14 = vpack.c.bf16 %v26_v13, %v25_v12  ;;  %v37_v17 = vpack.c.bf16 %v24_v16, %v23_v15  ;;  %v21_v18 = vld [vmem:[%s136_s1 + $0x10] sm:$0xff]  ;;  %v22_v19 = vld [vmem:[%s136_s1 + $0x18] sm:$0xff]  ;;  %v19_v21 = vld [vmem:[%s136_s1] sm:$0xff] }
   0x6   :  { %v36_v20 = vpack.c.bf16 %v22_v19, %v21_v18  ;;  %v20_v22 = vld [vmem:[%s136_s1 + $0x8] sm:$0xff]  ;;  %v17_v24 = vld [vmem:[%s137_s0] sm:$0xff] }
   0x7   :  { %v35_v23 = vpack.c.bf16 %v20_v22, %v19_v21  ;;  %v18_v25 = vpack.c.bf16 %v17_v24, %v17_v24 }
   0x8   :  { %44 = vmatpush.bf16.msra.mxu0 %v41_v5 }
   0xc   :  { %45 = vmatpush.bf16.msra.mxu0 %v40_v8 }
  0x10   :  { %46 = vmatpush.bf16.msra.mxu0 %v39_v11 }
  0x14   :  { %47 = vmatpush.bf16.msra.mxu0 %v38_v14 }
  0x18   :  { %48 = vmatpush.bf16.msra.mxu0 %v37_v17 }
  0x1c   :  { %49 = vmatpush.bf16.msra.mxu0 %v36_v20 }
  0x20   :  { %50 = vmatpush.bf16.msra.mxu0 %v35_v23 }
  0x23   :  { %51 = vmatmul.bf16.vlgmr.msra.gmra.mxu0 %v18_v25 }
  0xa0   :  { %v52_v26 = vpop.f32.mrf.mxu0 }
  0xa1   :  { %62 = vst [vmem:[%s138_s2] sm:$0xff] %v52_v26 }
  0xa8   :  { %v54_v27 = vpop.f32.mrf.mxu0 }

</bundles_post_ra>
